<compile_context>
chip_gen: v7x
topology: tpu7x:2x2x1
jax: 0.10.0
libtpu: 0.0.40
codegen_flags: <defaults>
</compile_context>

<pallas_src>
import jax
import jax.numpy as jnp
from jax import lax
from jax.experimental import pallas as pl
from jax.experimental.pallas import tpu as pltpu


NUM_INPUTS = 128
NUM_OUTPUTS = 16
HIDDEN = 512
IN_DIM = NUM_INPUTS + 4          # 132
FUSED_H = 2 * HIDDEN             # 1024  (critic hidden | actor hidden)
OUT_COLS = NUM_OUTPUTS + 1       # 17    (probs cols 0..15 | value col 16)


def _actor_critic_kernel(x_ref, w1_ref, b1_ref, w2_ref, b2_ref, out_ref):
    # x_ref: (IN_DIM, TILE_B) feature-major tile of the input (no HBM transpose).
    x_bf = x_ref[...].astype(jnp.bfloat16)
    w1_bf = w1_ref[...].astype(jnp.bfloat16)

    # ---- fused layer 1: contract over axis 0 of both operands -> (TILE_B, 1024)
    h = lax.dot_general(
        x_bf, w1_bf,
        dimension_numbers=(((0,), (0,)), ((), ())),
        preferred_element_type=jnp.float32,
    )
    h = jnp.maximum(h + b1_ref[...], 0.0)            # bias + ReLU in f32

    # ---- fused layer 2: block-diagonal (1024, 17) -> [logits | value]
    vl = jnp.dot(
        h.astype(jnp.bfloat16), w2_ref[...].astype(jnp.bfloat16),
        preferred_element_type=jnp.float32,
    ) + b2_ref[...]                                   # (TILE_B, 17)

    logits = vl[:, :NUM_OUTPUTS]                      # actor head
    value = vl[:, NUM_OUTPUTS:]                       # critic head

    # Numerically stable softmax over the class axis (f32).
    m = jnp.max(logits, axis=-1, keepdims=True)
    e = jnp.exp(logits - m)
    s = jnp.sum(e, axis=-1, keepdims=True)
    r = pl.reciprocal(s, approx=True)                 # EUP slot (near-free)
    r = r * (2.0 - s * r)                             # one Newton step -> f32 accuracy
    probs = e * r

    # Single lane-contiguous output tile: [probs (0..15) | value (16)]
    out_ref[...] = jnp.concatenate([probs, value], axis=-1)


def actor_critic_forward(param, params, tile_b=512):
    """param: (132, B) float32, feature-major (matches torch's permute([1,0]) input)."""
    in_dim, B = param.shape
    assert in_dim == IN_DIM
    assert tile_b % 128 == 0, "batch tile must be a multiple of 128 (lane dim of x)"

    # Batch tile: multiple of 128 (lane constraint on the (132, TILE_B) x block).
    tb = min(tile_b, 128 * pl.cdiv(B, 128))
    b_pad = tb * pl.cdiv(B, tb)
    x = param if b_pad == B else jnp.pad(param, ((0, 0), (0, b_pad - B)))

    out = pl.pallas_call(
        _actor_critic_kernel,
        out_shape=jax.ShapeDtypeStruct((b_pad, OUT_COLS), jnp.float32),
        grid_spec=pltpu.PrefetchScalarGridSpec(
            num_scalar_prefetch=0,
            grid=(b_pad // tb,),
            in_specs=[
                pl.BlockSpec((IN_DIM, tb), lambda i: (0, i)),          # x: streamed
                pl.BlockSpec((IN_DIM, FUSED_H), lambda i: (0, 0)),     # w1: resident
                pl.BlockSpec((1, FUSED_H), lambda i: (0, 0)),          # b1: resident
                pl.BlockSpec((FUSED_H, OUT_COLS), lambda i: (0, 0)),   # w2: resident
                pl.BlockSpec((1, OUT_COLS), lambda i: (0, 0)),         # b2: resident
            ],
            out_specs=pl.BlockSpec((tb, OUT_COLS), lambda i: (i, 0)),
        ),
        compiler_params=pltpu.CompilerParams(
            dimension_semantics=("parallel",),   # both TCs on v7x; no-op on v5e/v6e
        ),
    )(x, params["w1"], params["b1"], params["w2"], params["b2"])

    out = out[:B]
    probs = out[:, :NUM_OUTPUTS]
    value = out[:, NUM_OUTPUTS:]
    # TODO(synk): torch returns a Categorical(probs) distribution object; we return
    # the probs tensor itself (sample/log_prob can be built from it).
    return probs, value


def init_params(key):
    """PyTorch-style init, stored pre-fused.

    w1 = [wc1 | wa1]            : (132, 1024)
    b1 = [bc1 | ba1]            : (1, 1024)
    w2 = block-diag             : (1024, 17)  (critic rows -> col 16, actor rows -> cols 0..15)
    b2 = [ba2 | bc2]            : (1, 17)
    """
    ks = jax.random.split(key, 8)

    def unif(k, shape, fan_in):
        bound = 1.0 / jnp.sqrt(jnp.float32(fan_in))
        return jax.random.uniform(k, shape, jnp.float32, -bound, bound)

    wc1 = unif(ks[0], (IN_DIM, HIDDEN), IN_DIM)
    bc1 = unif(ks[1], (1, HIDDEN), IN_DIM)
    wc2 = unif(ks[2], (HIDDEN, 1), HIDDEN)
    bc2 = unif(ks[3], (1, 1), HIDDEN)
    wa1 = unif(ks[4], (IN_DIM, HIDDEN), IN_DIM)
    ba1 = unif(ks[5], (1, HIDDEN), IN_DIM)
    wa2 = unif(ks[6], (HIDDEN, NUM_OUTPUTS), HIDDEN)
    ba2 = unif(ks[7], (1, NUM_OUTPUTS), HIDDEN)

    w1 = jnp.concatenate([wc1, wa1], axis=1)
    b1 = jnp.concatenate([bc1, ba1], axis=1)
    w2 = jnp.zeros((FUSED_H, OUT_COLS), jnp.float32)
    w2 = w2.at[:HIDDEN, NUM_OUTPUTS:].set(wc2)     # critic -> value column
    w2 = w2.at[HIDDEN:, :NUM_OUTPUTS].set(wa2)     # actor  -> logit columns
    b2 = jnp.concatenate([ba2, bc2], axis=1)
    return {"w1": w1, "b1": b1, "w2": w2, "b2": b2}


def _reference(param, p):
    """Pure-JAX f32 reference, computed per-head (i.e. original PyTorch structure)."""
    x = jnp.transpose(param, (1, 0))
    wc1, wa1 = p["w1"][:, :HIDDEN], p["w1"][:, HIDDEN:]
    bc1, ba1 = p["b1"][:, :HIDDEN], p["b1"][:, HIDDEN:]
    wc2, bc2 = p["w2"][:HIDDEN, NUM_OUTPUTS:], p["b2"][:, NUM_OUTPUTS:]
    wa2, ba2 = p["w2"][HIDDEN:, :NUM_OUTPUTS], p["b2"][:, :NUM_OUTPUTS]
    hc = jnp.maximum(x @ wc1 + bc1, 0.0)
    value = hc @ wc2 + bc2
    ha = jnp.maximum(x @ wa1 + ba1, 0.0)
    probs = jax.nn.softmax(ha @ wa2 + ba2, axis=1)
    return probs, value


if __name__ == "__main__":
    key = jax.random.PRNGKey(0)
    k_param, k_w = jax.random.split(key)

    B = 200  # non-multiple of the tile: exercises the pad-and-slice path and a 2-step grid
    param = jax.random.normal(k_param, (IN_DIM, B), jnp.float32)   # (132, 200)
    params = init_params(k_w)

    probs, value = actor_critic_forward(param, params, tile_b=128)
    jax.block_until_ready((probs, value))

    probs_ref, value_ref = _reference(param, params)
    assert probs.shape == (B, NUM_OUTPUTS) and value.shape == (B, 1)
    # bf16 matmul operands (f32 accumulation) -> loosened tolerances vs f32 reference.
    assert jnp.allclose(probs, probs_ref, atol=5e-2, rtol=5e-2)
    assert jnp.allclose(value, value_ref, atol=5e-2, rtol=5e-2)
    assert jnp.allclose(jnp.sum(probs, axis=1), 1.0, atol=1e-3)

    print("KERNEL_OK")
</pallas_src>

<mosaic_0001>
module attributes {stable_mosaic.version = 11 : i64} {
  func.func @_actor_critic_kernel(%arg0: i32, %arg1: memref<132x128xf32, #tpu.memory_space<vmem>>, %arg2: memref<132x1024xf32, #tpu.memory_space<vmem>>, %arg3: memref<1x1024xf32, #tpu.memory_space<vmem>>, %arg4: memref<1024x17xf32, #tpu.memory_space<vmem>>, %arg5: memref<1x17xf32, #tpu.memory_space<vmem>>, %arg6: memref<128x17xf32, #tpu.memory_space<vmem>>) attributes {dimension_semantics = [#tpu.dimension_semantics<parallel>], iteration_bounds = array<i64: 2>, scalar_prefetch = 0 : i64, scratch_operands = 0 : i64, tpu.core_type = #tpu.core_type<tc>, window_params = [{transform_indices = @transform_0, window_bounds = array<i64: 132, 128>}, {pipeline_mode = #tpu.pipeline_mode<synchronous>, transform_indices = @transform_1, window_bounds = array<i64: 132, 1024>}, {pipeline_mode = #tpu.pipeline_mode<synchronous>, transform_indices = @transform_2, window_bounds = array<i64: 1, 1024>}, {pipeline_mode = #tpu.pipeline_mode<synchronous>, transform_indices = @transform_3, window_bounds = array<i64: 1024, 17>}, {pipeline_mode = #tpu.pipeline_mode<synchronous>, transform_indices = @transform_4, window_bounds = array<i64: 1, 17>}, {transform_indices = @transform_5, window_bounds = array<i64: 128, 17>}]} {
    %c0 = arith.constant 0 : index
    %c0_0 = arith.constant 0 : index
    %0 = vector.load %arg1[%c0, %c0_0] : memref<132x128xf32, #tpu.memory_space<vmem>>, vector<132x128xf32>
    %1 = arith.truncf %0 : vector<132x128xf32> to vector<132x128xbf16>
    %c0_1 = arith.constant 0 : index
    %c0_2 = arith.constant 0 : index
    %2 = vector.load %arg2[%c0_1, %c0_2] : memref<132x1024xf32, #tpu.memory_space<vmem>>, vector<132x1024xf32>
    %3 = arith.truncf %2 : vector<132x1024xf32> to vector<132x1024xbf16>
    %cst = arith.constant dense<0.000000e+00> : vector<128x1024xf32>
    %4 = tpu.matmul %1, %3, %cst {dimension_numbers = #tpu.dot_dimension_numbers<[0], [0], [1], [1], [0, 1, 1, 1], [], []>} : vector<132x128xbf16>, vector<132x1024xbf16>, vector<128x1024xf32> -> vector<128x1024xf32>
    %c0_3 = arith.constant 0 : index
    %c0_4 = arith.constant 0 : index
    %5 = vector.load %arg3[%c0_3, %c0_4] : memref<1x1024xf32, #tpu.memory_space<vmem>>, vector<1x1024xf32>
    %6 = vector.broadcast %5 : vector<1x1024xf32> to vector<128x1024xf32>
    %7 = arith.addf %4, %6 : vector<128x1024xf32>
    %cst_5 = arith.constant 0.000000e+00 : f32
    %8 = vector.broadcast %cst_5 : f32 to vector<128x1024xf32>
    %9 = arith.maximumf %7, %8 : vector<128x1024xf32>
    %10 = arith.truncf %9 : vector<128x1024xf32> to vector<128x1024xbf16>
    %c0_6 = arith.constant 0 : index
    %c0_7 = arith.constant 0 : index
    %11 = vector.load %arg4[%c0_6, %c0_7] : memref<1024x17xf32, #tpu.memory_space<vmem>>, vector<1024x17xf32>
    %12 = arith.truncf %11 : vector<1024x17xf32> to vector<1024x17xbf16>
    %cst_8 = arith.constant dense<0.000000e+00> : vector<128x17xf32>
    %13 = tpu.matmul %10, %12, %cst_8 {dimension_numbers = #tpu.dot_dimension_numbers<[1], [0], [0], [1], [0, 0, 1, 1], [], []>} : vector<128x1024xbf16>, vector<1024x17xbf16>, vector<128x17xf32> -> vector<128x17xf32>
    %c0_9 = arith.constant 0 : index
    %c0_10 = arith.constant 0 : index
    %14 = vector.load %arg5[%c0_9, %c0_10] : memref<1x17xf32, #tpu.memory_space<vmem>>, vector<1x17xf32>
    %15 = vector.broadcast %14 : vector<1x17xf32> to vector<128x17xf32>
    %16 = arith.addf %13, %15 : vector<128x17xf32>
    %17 = vector.extract_strided_slice %16 {offsets = [0, 0], sizes = [128, 16], strides = [1, 1]} : vector<128x17xf32> to vector<128x16xf32>
    %18 = vector.extract_strided_slice %16 {offsets = [0, 16], sizes = [128, 1], strides = [1, 1]} : vector<128x17xf32> to vector<128x1xf32>
    %cst_11 = arith.constant dense<0xFF800000> : vector<128xf32>
    %19 = vector.multi_reduction <maximumf>, %17, %cst_11 [1] : vector<128x16xf32> to vector<128xf32>
    %20 = vector.shape_cast %19 : vector<128xf32> to vector<128x1xf32>
    %21 = vector.broadcast %20 : vector<128x1xf32> to vector<128x16xf32>
    %22 = arith.subf %17, %21 : vector<128x16xf32>
    %23 = math.exp %22 : vector<128x16xf32>
    %cst_12 = arith.constant dense<0.000000e+00> : vector<128xf32>
    %24 = vector.multi_reduction <add>, %23, %cst_12 [1] : vector<128x16xf32> to vector<128xf32>
    %25 = vector.shape_cast %24 : vector<128xf32> to vector<128x1xf32>
    %26 = tpu.reciprocal %25 {approx = true} : vector<128x1xf32> -> vector<128x1xf32>
    %27 = arith.mulf %25, %26 : vector<128x1xf32>
    %cst_13 = arith.constant 2.000000e+00 : f32
    %28 = vector.broadcast %cst_13 : f32 to vector<128x1xf32>
    %29 = arith.subf %28, %27 : vector<128x1xf32>
    %30 = arith.mulf %26, %29 : vector<128x1xf32>
    %31 = vector.broadcast %30 : vector<128x1xf32> to vector<128x16xf32>
    %32 = arith.mulf %23, %31 : vector<128x16xf32>
    %33 = tpu.concatenate %32, %18 in 1 : vector<128x16xf32>, vector<128x1xf32> -> vector<128x17xf32>
    %c0_14 = arith.constant 0 : index
    %c0_15 = arith.constant 0 : index
    %34 = vector.load %arg6[%c0_14, %c0_15] : memref<128x17xf32, #tpu.memory_space<vmem>>, vector<128x17xf32>
    tpu.vector_store %arg6[%c0_14, %c0_15], %33 {strides = array<i32>} : memref<128x17xf32, #tpu.memory_space<vmem>>, vector<128x17xf32>,
    return
  }
  func.func @transform_0(%arg0: i32) -> (i32, i32) {
    %c0_i32 = arith.constant 0 : i32
    %c0_i32_0 = arith.constant 0 : i32
    return %c0_i32, %arg0 : i32, i32
  }
  func.func @transform_1(%arg0: i32) -> (i32, i32) {
    %c0_i32 = arith.constant 0 : i32
    %c0_i32_0 = arith.constant 0 : i32
    %c0_i32_1 = arith.constant 0 : i32
    return %c0_i32, %c0_i32_0 : i32, i32
  }
  func.func @transform_2(%arg0: i32) -> (i32, i32) {
    %c0_i32 = arith.constant 0 : i32
    %c0_i32_0 = arith.constant 0 : i32
    %c0_i32_1 = arith.constant 0 : i32
    return %c0_i32, %c0_i32_0 : i32, i32
  }
  func.func @transform_3(%arg0: i32) -> (i32, i32) {
    %c0_i32 = arith.constant 0 : i32
    %c0_i32_0 = arith.constant 0 : i32
    %c0_i32_1 = arith.constant 0 : i32
    return %c0_i32, %c0_i32_0 : i32, i32
  }
  func.func @transform_4(%arg0: i32) -> (i32, i32) {
    %c0_i32 = arith.constant 0 : i32
    %c0_i32_0 = arith.constant 0 : i32
    %c0_i32_1 = arith.constant 0 : i32
    return %c0_i32, %c0_i32_0 : i32, i32
  }
  func.func @transform_5(%arg0: i32) -> (i32, i32) {
    %c0_i32 = arith.constant 0 : i32
    %c0_i32_0 = arith.constant 0 : i32
    return %arg0, %c0_i32 : i32, i32
  }
}

</mosaic_0001>

<bundles_post_ra>
// kernel: tpu_custom_call.1
= control target key start
LH: loop header
LB: loop body
LE: loop exit
PB: predicated region body
PF: predicated region fallthrough
CT: control target
= control target key end

     0   :  { %10 = vsyncpa [#allocation3], 0  ;;  %s4312_s0 = inlined_call_operand.hbm [shape: f32[132,256], index: 0, kind: input, shape index: {}]   ;;  %s4313_s1 = inlined_call_operand.vmem [shape: f32[132,1024], index: 1, kind: input, shape index: {}]   ;;  %s4314_s2 = inlined_call_operand.vmem [shape: f32[1,1024], index: 2, kind: input, shape index: {}]   ;;  %s4315_s3 = inlined_call_operand.vmem [shape: f32[1024,17], index: 3, kind: input, shape index: {}]   ;;  %s4316_s4 = inlined_call_operand.vmem [shape: f32[1,17], index: 4, kind: input, shape index: {}]   ;;  %s4317_s5 = inlined_call_operand.vmem [shape: f32[256,17], index: 5, kind: output, shape index: {}]  }
   0x1   :  { %12 = vsyncpa [#allocation3 + $0x1], 0  ;;  %s2672_s18 = smov 0   ;;  %s2674_s19 = smov 0  }
   0x2   :  { %s2676_s20 = smov 0   ;;  %s2678_s21 = smov 0  }
   0x3 LB: > { %s2160_s22 = sadd.s32 4294967295, %s2636_s21   ;;  %s2692_s23 = sadd.s32 1, %s2636_s21   ;;  %s2636_s21 = sphi %s2678_s21, %s4323_s21   ;;  %s2632_s20 = sphi %s2676_s20, %s4322_s20   ;;  %s2628_s19 = sphi %s2674_s19, %s4321_s19   ;;  %s2624_s18 = sphi %s2672_s18, %s4320_s18  }
   0x4   : > { %s22_s24 = ssub.s32 %s2636_s21, %s2692_s23  ;;  %s25_s25 = sadd.s32 1, %s2632_s20 }
   0x5   : > { %p23_p0 = scmp.eq.s32.totalorder %s22_s24, 0  ;;  %p32_p1 = scmp.ne.s32.totalorder %s2632_s20, %s2628_s19 }
   0x6   : > { %p33_p2 = scmp.eq.s32.totalorder %s2636_s21, 0  ;;  %p38_p3 = scmp.ne.s32.totalorder %s2628_s19, %s2624_s18 }
   0x7   : > { %s2702_s26 = scalar_select %p23_p0, %s2632_s20, %s25_s25  }
   0x8   : > { %p34_p4 = por %p33_p2, %p32_p1  ;;  %p39_p5 = scmp.eq.s32.totalorder %s2160_s22, 0 }
   0x9   : > { %p2471_p6 = scmp.lt.s32.totalorder %s2636_s21, 2  ;;  %s184_s28 = sand.u32 1, %s2632_s20  }
   0xa   : > { %p2707_p7 = por %p39_p5, %p38_p3  ;;  %s2463_s29 = smul.u32 136, %s184_s28 }
   0xb   : > { %s2164_s30 = sshll.u32 %s2636_s21, 7  ;;  %p2713_p8 = pnand %p2471_p6, %p34_p4 }
   0xc   : > { %s2720_s9 = scalar_lea.hbm %s4312_s0, %s2164_s30  ;;  %s188_s10 = scalar_lea.vmem [#allocation2], %s2463_s29 }
   0xd   : > { %s194_s11 = sshll.u32 %s188_s10, 4  ;;  %s2724_s12 = scalar_lea.sflag [#allocation3], %s184_s28  ;;  %s2722_s11 = int_to_ptr.vmem [resolvable:$true] %s194_s11 }
   0xe   : > { %s2572_s13 = scalar_lea.hbm %s2720_s9, 2176  ;;  %p2574_p10 = pneg %p2713_p8 }
   0xf   : > { %p2573_p9 = scmp.ne.s32.totalorder %s2720_s9, %s2572_s13  ;;  %s2577_s16 = scalar_lea.hbm %s4312_s0, 4352 }
  0x10   : > { %p2578_p13 = scmp.lt.u32.totalorder %s2720_s9, %s4312_s0  ;;  %p2579_p0 = scmp.lt.u32.totalorder %s2577_s16, %s2572_s13 }
  0x11   : > { %p2575_p11 = pnand %p2574_p10, %p2573_p9  ;;  %p2581_p2 = scmp.lt.u32.totalorder %s2572_s13, %s2720_s9 }
  0x12   : > { %p2580_p1 = por %p2579_p0, %p2578_p13 }
  0x13   : > { %p2576_p12 = pneg %p2575_p11 }
  0x14   : > { %p2582_p3 = por %p2581_p2, %p2580_p1 }
  0x16   : > { %p2583_p4 = pnand %p2582_p3, %p2576_p12 }
  0x18   : > { %2586 = shalt.err (!%p2583_p4)
}
  0x19   : > { %s2587_s24 = scalar_lea.vmem %s2722_s11, 2176  ;;  %s2638_s25 = smov [#allocation2]  }
  0x1a   : > { %p2588_p5 = scmp.ne.s32.totalorder %s2722_s11, %s2587_s24  ;;  %s2592_s28 = sshll.u32 %s2638_s25, 4  ;;  %s2593_s28 = int_to_ptr.vmem [resolvable:$false] %s2592_s28 }
  0x1b   : > { %s2594_s29 = scalar_lea.vmem %s2593_s28, 4352  ;;  %p2595_p11 = scmp.lt.s32.totalorder %s2722_s11, %s2593_s28 }
  0x1c   : > { %p2590_p6 = pnand %p2588_p5, %p2574_p10  ;;  %p2596_p13 = scmp.lt.s32.totalorder %s2594_s29, %s2587_s24 }
  0x1e   : > { %p2591_p9 = pneg %p2590_p6  ;;  %p2597_p0 = por %p2596_p13, %p2595_p11 }
  0x20   : > { %p2598_p1 = pnand %p2597_p0, %p2591_p9 }
  0x22   : > { %2601 = shalt.err (!%p2598_p1)
}
  0x23   : > { %s2639_s30 = smov 256   ;;  %s2640_s7 = smov 128  }
  0x24   : > { %s2641_s8 = smov 8   ;;  %p2165_p10 = scmp.ge.s32.totalorder %s2636_s21, 1 }
  0x25   : > { %2470 = dma.hbm_to_vmem [thread:$0]  (!%p2713_p8), %s2720_s9, 2176, %s2722_s11, %s2724_s12, %s2639_s30, %s2640_s7, %s2641_s8  }
  0x26   : > { %p202_p12 = scmp.lt.s32.totalorder %s2636_s21, 3 }
  0x28   : > { %p203_p2 = pnand %p2165_p10, %p202_p12 }
  0x29   : > { %s208_s10 = sand.u32 (!%p203_p2), 1, %s2628_s19  }
  0x2a   : > { %206 = sbr.rel (%p203_p2) target bundleno = 1075 (0x433), region = 40  ;;  %s209_s14 = scalar_lea.sflag (!%p203_p2), [#allocation3], %s208_s10 }
  0x2b   : > { %s2464_s13 = smul.u32 (!%p203_p2), 136, %s208_s10 }
  0x2d   : > { %s2755_s15 = scalar_lea.vmem (!%p203_p2), [#allocation2], %s2464_s13 }
  0x31   : > { %2619 = dma.done.wait (%p2707_p7), %s209_s14, 2176  }
  0x32   : > { %2621 = vsyncadd (%p2707_p7), %s209_s14, 4294965120  ;;  %v262_v0 = vld [vmem:[%s2755_s15 + $0x80] sm:$0xf]  ;;  %v275_v8 = vld [vmem:[%s4313_s1 + $0x18] sm:$0xff]  ;;  %vm579_vm0 = vcmask 1041408   ;;  %vm554_vm1 = vcmask 31744  }
  0x33   : > { %v271_v1 = vpack.c.bf16 %v262_v0, %v262_v0  ;;  %v273_v2 = vld [vmem:[%s4313_s1 + $0x8] sm:$0xff]  ;;  %v272_v4 = vld [vmem:[%s4313_s1] sm:$0xff]  ;;  %v283_v9 = vld [vmem:[%s4313_s1 + $0x58] sm:$0xff]  ;;  %vm1835_vm2 = vcmask 130048   ;;  %s2166_s24 = sshll.u32 %s2160_s22, 4  ;;  %vm2076_vm3 = vcmask 138240  }
  0x34   : > { %v281_v3 = vld [vmem:[%s4313_s1 + $0x48] sm:$0xff]  ;;  %v280_v5 = vld [vmem:[%s4313_s1 + $0x40] sm:$0xff]  ;;  %v274_v10 = vld [vmem:[%s4313_s1 + $0x10] sm:$0xff]  ;;  %v411_v11 = vpack.c.bf16 %v283_v9, %v275_v8  ;;  %p240_p7 = scmp.lt.s32.totalorder %s2166_s24, 31 }
  0x35   : > { %538 = vxpose.xlu0.c.b16.start.end [1/1] (short) %v271_v1, 128  ;;  %v409_v6 = vpack.c.bf16 %v281_v3, %v273_v2  ;;  %v408_v7 = vpack.c.bf16 %v280_v5, %v272_v4  ;;  %v282_v12 = vld [vmem:[%s4313_s1 + $0x50] sm:$0xff]  ;;  %v289_v13 = vld [vmem:[%s4313_s1 + $0x88] sm:$0xff]  ;;  %v288_v17 = vld [vmem:[%s4313_s1 + $0x80] sm:$0xff] }
  0x36   : > { %v297_v14 = vld [vmem:[%s4313_s1 + $0xc8] sm:$0xff]  ;;  %v410_v15 = vpack.c.bf16 %v282_v12, %v274_v10  ;;  %v296_v18 = vld [vmem:[%s4313_s1 + $0xc0] sm:$0xff]  ;;  %v291_v19 = vld [vmem:[%s4313_s1 + $0x98] sm:$0xff]  ;;  %717 = vmatprep.subr.bf16.mxu1 %v411_v11  ;;  %s4325_s24 = smov (!%p240_p7, %s2166_s24), 31 }
  0x37   : > { %604 = vmatprep.subr.bf16.mxu0 %v409_v6  ;;  %v417_v16 = vpack.c.bf16 %v297_v14, %v289_v13  ;;  %v416_v20 = vpack.c.bf16 %v296_v18, %v288_v17  ;;  %v299_v21 = vld [vmem:[%s4313_s1 + $0xd8] sm:$0xff]  ;;  %v290_v22 = vld [vmem:[%s4313_s1 + $0x90] sm:$0xff]  ;;  %v305_v26 = vld [vmem:[%s4313_s1 + $0x108] sm:$0xff]  ;;  %s2167_s27 = sshll.u32 %s4325_s24, 3 }
  0x38   : > { %605 = vmatpush1.bf16.msra.mxu0 %v408_v7  ;;  %v298_v23 = vld [vmem:[%s4313_s1 + $0xd0] sm:$0xff]  ;;  %718 = vmatpush1.bf16.msra.mxu1 %v410_v15  ;;  %v419_v24 = vpack.c.bf16 %v299_v21, %v291_v19  ;;  %v313_v27 = vld [vmem:[%s4313_s1 + $0x148] sm:$0xff]  ;;  %v304_v28 = vld [vmem:[%s4313_s1 + $0x100] sm:$0xff]  ;;  %s4217_s22 = scalar_lea.vmem %s4317_s5, %s2167_s27 }
  0x39   : > { %606 = vmatprep.subr.bf16.mxu0 %v417_v16  ;;  %v418_v25 = vpack.c.bf16 %v298_v23, %v290_v22  ;;  %v425_v29 = vpack.c.bf16 %v313_v27, %v305_v26  ;;  %v312_v30 = vld [vmem:[%s4313_s1 + $0x140] sm:$0xff]  ;;  %v307_v31 = vld [vmem:[%s4313_s1 + $0x118] sm:$0xff]  ;;  %v306_v34 = vld [vmem:[%s4313_s1 + $0x110] sm:$0xff] }
  0x3a   : > { %v315_v32 = vld [vmem:[%s4313_s1 + $0x158] sm:$0xff]  ;;  %719 = vmatprep.subr.bf16.mxu1 %v419_v24  ;;  %v314_v35 = vld [vmem:[%s4313_s1 + $0x150] sm:$0xff]  ;;  %v321_v36 = vld [vmem:[%s4313_s1 + $0x188] sm:$0xff]  ;;  %v424_v37 = vpack.c.bf16 %v312_v30, %v304_v28 }
  0x3b   : > { %v427_v33 = vpack.c.bf16 %v315_v32, %v307_v31  ;;  %v329_v38 = vld [vmem:[%s4313_s1 + $0x1c8] sm:$0xff]  ;;  %v320_v39 = vld [vmem:[%s4313_s1 + $0x180] sm:$0xff]  ;;  %v426_v41 = vpack.c.bf16 %v314_v35, %v306_v34  ;;  %v323_v43 = vld [vmem:[%s4313_s1 + $0x198] sm:$0xff] }
  0x3c   : > { %607 = vmatpush1.bf16.msra.mxu0 %v416_v20  ;;  %v328_v40 = vld [vmem:[%s4313_s1 + $0x1c0] sm:$0xff]  ;;  %720 = vmatpush1.bf16.msra.mxu1 %v418_v25  ;;  %v433_v42 = vpack.c.bf16 %v329_v38, %v321_v36  ;;  %v331_v44 = vld [vmem:[%s4313_s1 + $0x1d8] sm:$0xff]  ;;  %v322_v45 = vld [vmem:[%s4313_s1 + $0x190] sm:$0xff] }
  0x3d   : > { %608 = vmatprep.subr.bf16.mxu0 %v425_v29  ;;  %721 = vmatprep.subr.bf16.mxu1 %v427_v33  ;;  %v435_v46 = vpack.c.bf16 %v331_v44, %v323_v43  ;;  %v330_v47 = vld [vmem:[%s4313_s1 + $0x1d0] sm:$0xff]  ;;  %v337_v48 = vld [vmem:[%s4313_s1 + $0x208] sm:$0xff]  ;;  %v339_v50 = vld [vmem:[%s4313_s1 + $0x218] sm:$0xff]  ;;  %v432_v51 = vpack.c.bf16 %v328_v40, %v320_v39 }
  0x3e   : > { %v345_v49 = vld [vmem:[%s4313_s1 + $0x248] sm:$0xff]  ;;  %v347_v52 = vld [vmem:[%s4313_s1 + $0x258] sm:$0xff]  ;;  %v434_v53 = vpack.c.bf16 %v330_v47, %v322_v45  ;;  %v336_v55 = vld [vmem:[%s4313_s1 + $0x200] sm:$0xff] }
  0x3f   : > { %v441_v54 = vpack.c.bf16 %v345_v49, %v337_v48  ;;  %v344_v56 = vld [vmem:[%s4313_s1 + $0x240] sm:$0xff]  ;;  %v338_v57 = vld [vmem:[%s4313_s1 + $0x210] sm:$0xff]  ;;  %v443_v58 = vpack.c.bf16 %v347_v52, %v339_v50  ;;  %v353_v60 = vld [vmem:[%s4313_s1 + $0x288] sm:$0xff] }
  0x40   : > { %609 = vmatpush1.bf16.msra.mxu0 %v424_v37  ;;  %722 = vmatpush1.bf16.msra.mxu1 %v426_v41  ;;  %v346_v59 = vld [vmem:[%s4313_s1 + $0x250] sm:$0xff]  ;;  %v361_v61 = vld [vmem:[%s4313_s1 + $0x2c8] sm:$0xff]  ;;  %v355_v62 = vld [vmem:[%s4313_s1 + $0x298] sm:$0xff]  ;;  %v440_v0 = vpack.c.bf16 %v344_v56, %v336_v55 }
  0x41   : > { %610 = vmatprep.subr.bf16.mxu0 %v433_v42  ;;  %723 = vmatprep.subr.bf16.mxu1 %v435_v46  ;;  %v363_v63 = vld [vmem:[%s4313_s1 + $0x2d8] sm:$0xff]  ;;  %v246_v1 = vld [vmem:[%s2755_s15] sm:$0xff]  ;;  %v442_v2 = vpack.c.bf16 %v346_v59, %v338_v57  ;;  %v449_v3 = vpack.c.bf16 %v361_v61, %v353_v60  ;;  %v354_v6 = vld [vmem:[%s4313_s1 + $0x290] sm:$0xff] }
  0x42   : > { %v352_v4 = vld [vmem:[%s4313_s1 + $0x280] sm:$0xff]  ;;  %v451_v7 = vpack.c.bf16 %v363_v63, %v355_v62  ;;  %v362_v8 = vld [vmem:[%s4313_s1 + $0x2d0] sm:$0xff]  ;;  %v369_v9 = vld [vmem:[%s4313_s1 + $0x308] sm:$0xff] }
  0x43   : > { %v360_v5 = vld [vmem:[%s4313_s1 + $0x2c0] sm:$0xff]  ;;  %v377_v10 = vld [vmem:[%s4313_s1 + $0x348] sm:$0xff]  ;;  %v371_v12 = vld [vmem:[%s4313_s1 + $0x318] sm:$0xff]  ;;  %v450_v16 = vpack.c.bf16 %v362_v8, %v354_v6 }
  0x44   : > { %611 = vmatpush1.bf16.msra.mxu0 %v432_v51  ;;  %724 = vmatpush1.bf16.msra.mxu1 %v434_v53  ;;  %v247_v11 = vld [vmem:[%s2755_s15 + $0x8] sm:$0xff]  ;;  %v379_v13 = vld [vmem:[%s4313_s1 + $0x358] sm:$0xff]  ;;  %v448_v14 = vpack.c.bf16 %v360_v5, %v352_v4  ;;  %v457_v17 = vpack.c.bf16 %v377_v10, %v369_v9  ;;  %v368_v18 = vld [vmem:[%s4313_s1 + $0x300] sm:$0xff] }
  0x45   : > { %612 = vmatprep.subr.bf16.mxu0 %v441_v54  ;;  %725 = vmatprep.subr.bf16.mxu1 %v443_v58  ;;  %v248_v15 = vld [vmem:[%s2755_s15 + $0x10] sm:$0xff]  ;;  %v376_v19 = vld [vmem:[%s4313_s1 + $0x340] sm:$0xff]  ;;  %v263_v21 = vpack.c.bf16 %v247_v11, %v246_v1  ;;  %v459_v22 = vpack.c.bf16 %v379_v13, %v371_v12  ;;  %v385_v24 = vld [vmem:[%s4313_s1 + $0x388] sm:$0xff] }
  0x46   : > { %v370_v20 = vld [vmem:[%s4313_s1 + $0x310] sm:$0xff]  ;;  %v393_v25 = vld [vmem:[%s4313_s1 + $0x3c8] sm:$0xff]  ;;  %v249_v26 = vld [vmem:[%s2755_s15 + $0x18] sm:$0xff]  ;;  %v456_v29 = vpack.c.bf16 %v376_v19, %v368_v18 }
  0x47   : > { %v378_v23 = vld [vmem:[%s4313_s1 + $0x350] sm:$0xff]  ;;  %v387_v27 = vld [vmem:[%s4313_s1 + $0x398] sm:$0xff]  ;;  %v250_v30 = vld [vmem:[%s2755_s15 + $0x20] sm:$0xff]  ;;  %v465_v32 = vpack.c.bf16 %v393_v25, %v385_v24  ;;  %v264_v36 = vpack.c.bf16 %v249_v26, %v248_v15 }
  0x48   : > { %613 = vmatpush1.bf16.msra.mxu0 %v440_v0  ;;  %726 = vmatpush1.bf16.msra.mxu1 %v442_v2  ;;  %v395_v28 = vld [vmem:[%s4313_s1 + $0x3d8] sm:$0xff]  ;;  %v458_v31 = vpack.c.bf16 %v378_v23, %v370_v20  ;;  %v384_v33 = vld [vmem:[%s4313_s1 + $0x380] sm:$0xff]  ;;  %v386_v35 = vld [vmem:[%s4313_s1 + $0x390] sm:$0xff] }
  0x49   : > { %614 = vmatprep.subr.bf16.mxu0 %v449_v3  ;;  %727 = vmatprep.subr.bf16.mxu1 %v451_v7  ;;  %v392_v34 = vld [vmem:[%s4313_s1 + $0x3c0] sm:$0xff]  ;;  %v467_v37 = vpack.c.bf16 %v395_v28, %v387_v27  ;;  %v394_v38 = vld [vmem:[%s4313_s1 + $0x3d0] sm:$0xff]  ;;  %v401_v39 = vld [vmem:[%s4313_s1 + $0x408] sm:$0xf] }
  0x4a   : > { %v400_v40 = vld [vmem:[%s4313_s1 + $0x400] sm:$0xf]  ;;  %v251_v41 = vld [vmem:[%s2755_s15 + $0x28] sm:$0xff]  ;;  %v403_v42 = vld [vmem:[%s4313_s1 + $0x418] sm:$0xf]  ;;  %v464_v44 = vpack.c.bf16 %v392_v34, %v384_v33  ;;  %v466_v45 = vpack.c.bf16 %v394_v38, %v386_v35  ;;  %v473_v46 = vpack.c.bf16 %v401_v39, %v401_v39 }
  0x4b   : > { %v402_v43 = vld [vmem:[%s4313_s1 + $0x410] sm:$0xf]  ;;  %v472_v47 = vpack.c.bf16 %v400_v40, %v400_v40  ;;  %v265_v48 = vpack.c.bf16 %v251_v41, %v250_v30  ;;  %v475_v50 = vpack.c.bf16 %v403_v42, %v403_v42  ;;  %v277_v52 = vld [vmem:[%s4313_s1 + $0x28] sm:$0xff]  ;;  %v253_v54 = vld [vmem:[%s2755_s15 + $0x38] sm:$0xff] }
  0x4c   : > { %615 = vmatpush1.bf16.msra.mxu0 %v448_v14  ;;  %728 = vmatpush1.bf16.msra.mxu1 %v450_v16  ;;  %v252_v49 = vld [vmem:[%s2755_s15 + $0x30] sm:$0xff]  ;;  %v474_v51 = vpack.c.bf16 %v402_v43, %v402_v43  ;;  %v285_v53 = vld [vmem:[%s4313_s1 + $0x68] sm:$0xff]  ;;  %v257_v2 = vld [vmem:[%s2755_s15 + $0x58] sm:$0xff] }
  0x4d   : > { %616 = vmatprep.subr.bf16.mxu0 %v457_v17  ;;  %729 = vmatprep.subr.bf16.mxu1 %v459_v22  ;;  %v279_v55 = vld [vmem:[%s4313_s1 + $0x38] sm:$0xff]  ;;  %v581_v57 = vsel %vm579_vm0, %v472_v47, 0  ;;  %v413_v58 = vpack.c.bf16 %v285_v53, %v277_v52  ;;  %v266_v59 = vpack.c.bf16 %v253_v54, %v252_v49  ;;  %v254_v62 = vld [vmem:[%s2755_s15 + $0x40] sm:$0xff]  ;;  %v255_v63 = vld [vmem:[%s2755_s15 + $0x48] sm:$0xff] }
  0x4e   : > { %v287_v56 = vld [vmem:[%s4313_s1 + $0x78] sm:$0xff]  ;;  %v587_v60 = vsel %vm579_vm0, %v474_v51, 0  ;;  %v267_v0 = vpack.c.bf16 %v255_v63, %v254_v62  ;;  %v258_v4 = vld [vmem:[%s2755_s15 + $0x60] sm:$0xff]  ;;  %v259_v5 = vld [vmem:[%s2755_s15 + $0x68] sm:$0xff] }
  0x4f   : > { %v415_v61 = vpack.c.bf16 %v287_v56, %v279_v55  ;;  %v256_v1 = vld [vmem:[%s2755_s15 + $0x50] sm:$0xff]  ;;  %v269_v6 = vpack.c.bf16 %v259_v5, %v258_v4  ;;  %v261_v8 = vld [vmem:[%s2755_s15 + $0x78] sm:$0xff]  ;;  %v293_v22 = vld [vmem:[%s4313_s1 + $0xa8] sm:$0xff] }
  0x50   : > { %617 = vmatpush1.bf16.msra.mxu0 %v456_v29  ;;  %730 = vmatpush1.bf16.msra.mxu1 %v458_v31  ;;  %v268_v3 = vpack.c.bf16 %v257_v2, %v256_v1  ;;  %v260_v7 = vld [vmem:[%s2755_s15 + $0x70] sm:$0xff]  ;;  %v276_v17 = vld [vmem:[%s4313_s1 + $0x20] sm:$0xff]  ;;  %v301_v23 = vld [vmem:[%s4313_s1 + $0xe8] sm:$0xff] }
  0x51   : > { %618 = vmatprep.subr.bf16.mxu0 %v465_v32  ;;  %731 = vmatprep.subr.bf16.mxu1 %v467_v37  ;;  %v270_v9 = vpack.c.bf16 %v261_v8, %v260_v7  ;;  %v284_v18 = vld [vmem:[%s4313_s1 + $0x60] sm:$0xff]  ;;  %v278_v20 = vld [vmem:[%s4313_s1 + $0x30] sm:$0xff]  ;;  %v295_v24 = vld [vmem:[%s4313_s1 + $0xb8] sm:$0xff]  ;;  %v421_v32 = vpack.c.bf16 %v301_v23, %v293_v22 }
  0x52   : > { %522 = vxpose.xlu0.c.b16.start [1/8] %v263_v21, 128  ;;  %v286_v21 = vld [vmem:[%s4313_s1 + $0x70] sm:$0xff]  ;;  %v303_v25 = vld [vmem:[%s4313_s1 + $0xf8] sm:$0xff]  ;;  %v412_v26 = vpack.c.bf16 %v284_v18, %v276_v17  ;;  %v292_v28 = vld [vmem:[%s4313_s1 + $0xa0] sm:$0xff] }
  0x53   : > { %v414_v27 = vpack.c.bf16 %v286_v21, %v278_v20  ;;  %v300_v29 = vld [vmem:[%s4313_s1 + $0xe0] sm:$0xff]  ;;  %v294_v30 = vld [vmem:[%s4313_s1 + $0xb0] sm:$0xff]  ;;  %v423_v33 = vpack.c.bf16 %v303_v25, %v295_v24  ;;  %v309_v35 = vld [vmem:[%s4313_s1 + $0x128] sm:$0xff] }
  0x54   : > { %619 = vmatpush1.bf16.msra.mxu0 %v464_v44  ;;  %732 = vmatpush1.bf16.msra.mxu1 %v466_v45  ;;  %v302_v34 = vld [vmem:[%s4313_s1 + $0xf0] sm:$0xff]  ;;  %v311_v37 = vld [vmem:[%s4313_s1 + $0x138] sm:$0xff]  ;;  %v420_v39 = vpack.c.bf16 %v300_v29, %v292_v28  ;;  %v308_v42 = vld [vmem:[%s4313_s1 + $0x120] sm:$0xff] }
  0x55   : > { %2168 = vmatprep.subr.msk.bf16.mxu0 %vm579_vm0, %v473_v46  ;;  %2177 = vmatprep.subr.msk.bf16.mxu1 %vm579_vm0, %v475_v50  ;;  %v319_v38 = vld [vmem:[%s4313_s1 + $0x178] sm:$0xff]  ;;  %v422_v40 = vpack.c.bf16 %v302_v34, %v294_v30  ;;  %v316_v43 = vld [vmem:[%s4313_s1 + $0x160] sm:$0xff]  ;;  %v310_v45 = vld [vmem:[%s4313_s1 + $0x130] sm:$0xff] }
  0x56   : > { %523 = vxpose.xlu0.c.b16.cont [2/8] %v264_v36, 128  ;;  %v317_v36 = vld [vmem:[%s4313_s1 + $0x168] sm:$0xff]  ;;  %v431_v44 = vpack.c.bf16 %v319_v38, %v311_v37  ;;  %v318_v46 = vld [vmem:[%s4313_s1 + $0x170] sm:$0xff]  ;;  %v327_v49 = vld [vmem:[%s4313_s1 + $0x1b8] sm:$0xff]  ;;  %v428_v52 = vpack.c.bf16 %v316_v43, %v308_v42 }
  0x57   : > { %v429_v41 = vpack.c.bf16 %v317_v36, %v309_v35  ;;  %v325_v47 = vld [vmem:[%s4313_s1 + $0x1a8] sm:$0xff]  ;;  %v335_v50 = vld [vmem:[%s4313_s1 + $0x1f8] sm:$0xff]  ;;  %v430_v53 = vpack.c.bf16 %v318_v46, %v310_v45  ;;  %v324_v54 = vld [vmem:[%s4313_s1 + $0x1a0] sm:$0xff] }
  0x58   : > { %621 = vmatpush1.bf16.msra.mxu0 %v581_v57  ;;  %734 = vmatpush1.bf16.msra.mxu1 %v587_v60  ;;  %v332_v55 = vld [vmem:[%s4313_s1 + $0x1e0] sm:$0xff]  ;;  %v439_v57 = vpack.c.bf16 %v335_v50, %v327_v49  ;;  %v341_v60 = vld [vmem:[%s4313_s1 + $0x228] sm:$0xff]  ;;  %v343_v62 = vld [vmem:[%s4313_s1 + $0x238] sm:$0xff] }
  0x59   : > { %830 = vmatprep.subr.bf16.mxu0 %v413_v58  ;;  %943 = vmatprep.subr.bf16.mxu1 %v415_v61  ;;  %v326_v58 = vld [vmem:[%s4313_s1 + $0x1b0] sm:$0xff]  ;;  %v349_v61 = vld [vmem:[%s4313_s1 + $0x268] sm:$0xff]  ;;  %v351_v63 = vld [vmem:[%s4313_s1 + $0x278] sm:$0xff] }
  0x5a   : > { %524 = vxpose.xlu0.c.b16.cont [3/8] %v265_v48, 128  ;;  %v333_v48 = vld [vmem:[%s4313_s1 + $0x1e8] sm:$0xff]  ;;  %v340_v2 = vld [vmem:[%s4313_s1 + $0x220] sm:$0xff]  ;;  %v445_v4 = vpack.c.bf16 %v349_v61, %v341_v60  ;;  %v447_v5 = vpack.c.bf16 %v351_v63, %v343_v62  ;;  %v350_v7 = vld [vmem:[%s4313_s1 + $0x270] sm:$0xff] }
  0x5b   : > { %v437_v56 = vpack.c.bf16 %v333_v48, %v325_v47  ;;  %v357_v8 = vld [vmem:[%s4313_s1 + $0x2a8] sm:$0xff]  ;;  %v359_v17 = vld [vmem:[%s4313_s1 + $0x2b8] sm:$0xff]  ;;  %v356_v23 = vld [vmem:[%s4313_s1 + $0x2a0] sm:$0xff] }
  0x5c   : > { %v367_v18 = vld [vmem:[%s4313_s1 + $0x2f8] sm:$0xff]  ;;  %v364_v24 = vld [vmem:[%s4313_s1 + $0x2e0] sm:$0xff]  ;;  %v366_v28 = vld [vmem:[%s4313_s1 + $0x2f0] sm:$0xff] }
  0x5d   : > { %v373_v29 = vld [vmem:[%s4313_s1 + $0x328] sm:$0xff]  ;;  %v452_v34 = vpack.c.bf16 %v364_v24, %v356_v23  ;;  %v372_v36 = vld [vmem:[%s4313_s1 + $0x320] sm:$0xff]  ;;  %v399_v45 = vld [vmem:[%s4313_s1 + $0x3f8] sm:$0xff] }
  0x5e   : > { %525 = vxpose.xlu0.c.b16.cont [4/8] %v266_v59, 128  ;;  %v334_v59 = vld [vmem:[%s4313_s1 + $0x1f0] sm:$0xff]  ;;  %v381_v30 = vld [vmem:[%s4313_s1 + $0x368] sm:$0xff]  ;;  %v380_v37 = vld [vmem:[%s4313_s1 + $0x360] sm:$0xff] }
  0x5f   : > { %v438_v1 = vpack.c.bf16 %v334_v59, %v326_v58  ;;  %v461_v38 = vpack.c.bf16 %v381_v30, %v373_v29  ;;  %v389_v42 = vld [vmem:[%s4313_s1 + $0x3a8] sm:$0xff]  ;;  %v460_v47 = vpack.c.bf16 %v380_v37, %v372_v36  ;;  %v388_v49 = vld [vmem:[%s4313_s1 + $0x3a0] sm:$0xff]  ;;  %v407_v58 = vld [vmem:[%s4313_s1 + $0x438] sm:$0xf] }
  0x60   : > { %v397_v43 = vld [vmem:[%s4313_s1 + $0x3e8] sm:$0xff]  ;;  %v396_v50 = vld [vmem:[%s4313_s1 + $0x3e0] sm:$0xff]  ;;  %v406_v59 = vld [vmem:[%s4313_s1 + $0x430] sm:$0xf] }
  0x61   : > { %v468_v60 = vpack.c.bf16 %v396_v50, %v388_v49  ;;  %v1248_v23 = vld [vmem:[%s4315_s3] sm:$0xff]  ;;  %v1249_v24 = vld [vmem:[%s4315_s3 + $0x8] sm:$0xff]  ;;  %v1299_v29 = vld [vmem:[%s4315_s3 + $0x198] sm:$0xff] }
  0x62   : > { %526 = vxpose.xlu0.c.b16.cont [5/8] %v267_v0, 128  ;;  %v436_v0 = vpack.c.bf16 %v332_v55, %v324_v54  ;;  %v390_v54 = vld [vmem:[%s4313_s1 + $0x3b0] sm:$0xff]  ;;  %v1376_v30 = vpack.c.bf16 %v1249_v24, %v1248_v23  ;;  %v1285_v49 = vld [vmem:[%s4315_s3 + $0x128] sm:$0xff]  ;;  %v1275_v23 = vld [vmem:[%s4315_s3 + $0xd8] sm:$0xff] }
  0x63   : > { %v398_v55 = vld [vmem:[%s4313_s1 + $0x3f0] sm:$0xff] }
  0x64   : > { %v470_v61 = vpack.c.bf16 %v398_v55, %v390_v54  ;;  %v1282_v37 = vld [vmem:[%s4315_s3 + $0x110] sm:$0xff]  ;;  %v1303_v54 = vld [vmem:[%s4315_s3 + $0x1b8] sm:$0xff] }
  0x65   : > { %v1270_v50 = vld [vmem:[%s4315_s3 + $0xb0] sm:$0xff] }
  0x66   : > { %527 = vxpose.xlu0.c.b16.cont [6/8] %v268_v3, 128  ;;  %v348_v3 = vld [vmem:[%s4313_s1 + $0x260] sm:$0xff]  ;;  %v1306_v24 = vld [vmem:[%s4315_s3 + $0x1d0] sm:$0xff] }
  0x67   : > { %v444_v21 = vpack.c.bf16 %v348_v3, %v340_v2  ;;  %v1264_v2 = vld [vmem:[%s4315_s3 + $0x80] sm:$0xff]  ;;  %v1265_v3 = vld [vmem:[%s4315_s3 + $0x88] sm:$0xff] }
  0x6a   : > { %528 = vxpose.xlu0.c.b16.cont [7/8] %v269_v6, 128  ;;  %v342_v6 = vld [vmem:[%s4313_s1 + $0x230] sm:$0xff] }
  0x6b   : > { %v446_v22 = vpack.c.bf16 %v350_v7, %v342_v6 }
  0x6e   : > { %529 = vxpose.xlu0.c.b16.end [8/8] %v270_v9, 128  ;;  %v365_v9 = vld [vmem:[%s4313_s1 + $0x2e8] sm:$0xff] }
  0x6f   : > { %v453_v25 = vpack.c.bf16 %v365_v9, %v357_v8  ;;  %v1384_v9 = vpack.c.bf16 %v1265_v3, %v1264_v2  ;;  %v1305_v2 = vld [vmem:[%s4315_s3 + $0x1c8] sm:$0xff] }
  0x9b   : > { %v2998_v10 = vpop.trf.xlu0 }
  0x9c   : > { %2169 = vmatprep.mubr.msk.bf16.mxu0 %vm554_vm1, %v2998_v10  ;;  %2178 = vmatprep.mubr.msk.bf16.mxu1 %vm554_vm1, %v2998_v10 }
  0x9f   : > { %v3004_v11 = vpop.trf.xlu0 }
  0xa3   : > { %v3006_v12 = vpop.trf.xlu0 }
  0xa7   : > { %v3008_v13 = vpop.trf.xlu0 }
  0xab   : > { %v3010_v14 = vpop.trf.xlu0 }
  0xaf   : > { %v3012_v15 = vpop.trf.xlu0 }
  0xb3   : > { %v3014_v16 = vpop.trf.xlu0 }
  0xb7   : > { %v3022_v19 = vpop.trf.xlu0 }
  0xbb   : > { %v3051_v31 = vpop.trf.xlu0 }
  0xbc   : > { %637 = vmatmul.mubr.bf16.vlgmr.msra.gmra.mrb[0].mxu0 %v3051_v31  ;;  %750 = vmatmul.mubr.bf16.vlgmr.msra.gmra.mrb[0].mxu1 %v3051_v31 }
  0xbd   : > { %831 = vmatpush1.bf16.msra.mxu0 %v412_v26  ;;  %2170 = vmatprep.mubr.msk.bf16.mxu0 %vm554_vm1, %v3004_v11  ;;  %v455_v26 = vpack.c.bf16 %v367_v18, %v359_v17 }
  0xbe   : > { %2179 = vmatprep.mubr.msk.bf16.mxu1 %vm554_vm1, %v3004_v11  ;;  %944 = vmatpush1.bf16.msra.mxu1 %v414_v27  ;;  %v358_v27 = vld [vmem:[%s4313_s1 + $0x2b0] sm:$0xff] }
  0xbf   : > { %832 = vmatprep.subr.bf16.mxu0 %v421_v32  ;;  %945 = vmatprep.subr.bf16.mxu1 %v423_v33  ;;  %v3098_v51 = vpop.trf.xlu0  ;;  %v375_v32 = vld [vmem:[%s4313_s1 + $0x338] sm:$0xff]  ;;  %v454_v35 = vpack.c.bf16 %v366_v28, %v358_v27  ;;  %v1298_v28 = vld [vmem:[%s4315_s3 + $0x190] sm:$0xff] }
  0xc0   : > { %v383_v33 = vld [vmem:[%s4313_s1 + $0x378] sm:$0xff]  ;;  %v1401_v36 = vpack.c.bf16 %v1299_v29, %v1298_v28 }
  0xc1   : > { %833 = vmatpush1.bf16.msra.mxu0 %v420_v39  ;;  %v463_v39 = vpack.c.bf16 %v383_v33, %v375_v32  ;;  %v1267_v27 = vld [vmem:[%s4315_s3 + $0x98] sm:$0xff]  ;;  %v1250_v33 = vld [vmem:[%s4315_s3 + $0x10] sm:$0xff] }
  0xc2   : > { %946 = vmatpush1.bf16.msra.mxu1 %v422_v40  ;;  %834 = vmatprep.subr.bf16.mxu0 %v429_v41  ;;  %v374_v40 = vld [vmem:[%s4313_s1 + $0x330] sm:$0xff]  ;;  %v1259_v28 = vld [vmem:[%s4315_s3 + $0x58] sm:$0xff] }
  0xc3   : > { %947 = vmatprep.subr.bf16.mxu1 %v431_v44  ;;  %v3154_v20 = vpop.trf.xlu0  ;;  %v382_v41 = vld [vmem:[%s4313_s1 + $0x370] sm:$0xff]  ;;  %v391_v44 = vld [vmem:[%s4313_s1 + $0x3b8] sm:$0xff] }
  0xc4   : > { %647 = vmatmul.mubr.bf16.gmra.mrb[4].mxu0 %v3098_v51  ;;  %760 = vmatmul.mubr.bf16.gmra.mrb[4].mxu1 %v3098_v51  ;;  %v462_v48 = vpack.c.bf16 %v382_v41, %v374_v40  ;;  %v1269_v40 = vld [vmem:[%s4315_s3 + $0xa8] sm:$0xff]  ;;  %v1300_v41 = vld [vmem:[%s4315_s3 + $0x1a0] sm:$0xff] }
  0xc5   : > { %2171 = vmatprep.mubr.msk.bf16.mxu0 %vm554_vm1, %v3006_v12  ;;  %2180 = vmatprep.mubr.msk.bf16.mxu1 %vm554_vm1, %v3006_v12 }
  0xc6   : > { %835 = vmatpush1.bf16.msra.mxu0 %v428_v52  ;;  %948 = vmatpush1.bf16.msra.mxu1 %v430_v53  ;;  %v469_v52 = vpack.c.bf16 %v397_v43, %v389_v42  ;;  %v471_v53 = vpack.c.bf16 %v399_v45, %v391_v44  ;;  %v1301_v42 = vld [vmem:[%s4315_s3 + $0x1a8] sm:$0xff]  ;;  %v1252_v44 = vld [vmem:[%s4315_s3 + $0x20] sm:$0xff] }
  0xc7   : > { %836 = vmatprep.subr.bf16.mxu0 %v437_v56  ;;  %949 = vmatprep.subr.bf16.mxu1 %v439_v57  ;;  %v3210_v46 = vpop.trf.xlu0  ;;  %v405_v56 = vld [vmem:[%s4313_s1 + $0x428] sm:$0xf]  ;;  %v404_v57 = vld [vmem:[%s4313_s1 + $0x420] sm:$0xf] }
  0xc8   : > { %v477_v62 = vpack.c.bf16 %v405_v56, %v405_v56  ;;  %v476_v63 = vpack.c.bf16 %v404_v57, %v404_v57  ;;  %v1253_v45 = vld [vmem:[%s4315_s3 + $0x28] sm:$0xff]  ;;  %v1254_v57 = vld [vmem:[%s4315_s3 + $0x30] sm:$0xff] }
  0xc9   : > { %v1378_v55 = vpack.c.bf16 %v1253_v45, %v1252_v44  ;;  %v1278_v45 = vld [vmem:[%s4315_s3 + $0xf0] sm:$0xff] }
  0xca   : > { %837 = vmatpush1.bf16.msra.mxu0 %v436_v0  ;;  %950 = vmatpush1.bf16.msra.mxu1 %v438_v1  ;;  %v479_v0 = vpack.c.bf16 %v407_v58, %v407_v58  ;;  %v478_v1 = vpack.c.bf16 %v406_v59, %v406_v59  ;;  %v593_v7 = vsel %vm579_vm0, %v476_v63, 0  ;;  %v1255_v58 = vld [vmem:[%s4315_s3 + $0x38] sm:$0xff]  ;;  %v1272_v63 = vld [vmem:[%s4315_s3 + $0xc0] sm:$0xff] }
  0xcb   : > { %838 = vmatprep.subr.bf16.mxu0 %v445_v4  ;;  %951 = vmatprep.subr.bf16.mxu1 %v447_v5  ;;  %v1296_v4 = vld [vmem:[%s4315_s3 + $0x180] sm:$0xff]  ;;  %v1297_v5 = vld [vmem:[%s4315_s3 + $0x188] sm:$0xff]  ;;  %v3254_v6 = vpop.trf.xlu0 }
  0xcc   : > { %657 = vmatmul.mubr.bf16.gmra.mrb[8].mxu0 %v3154_v20  ;;  %770 = vmatmul.mubr.bf16.gmra.mrb[8].mxu1 %v3154_v20  ;;  %v599_v8 = vsel %vm579_vm0, %v478_v1, 0  ;;  %v1400_v17 = vpack.c.bf16 %v1297_v5, %v1296_v4  ;;  %v1304_v1 = vld [vmem:[%s4315_s3 + $0x1c0] sm:$0xff]  ;;  %v1257_v5 = vld [vmem:[%s4315_s3 + $0x48] sm:$0xff] }
  0xcd   : > { %2172 = vmatprep.mubr.msk.bf16.mxu0 %vm554_vm1, %v3008_v13  ;;  %2181 = vmatprep.mubr.msk.bf16.mxu1 %vm554_vm1, %v3008_v13  ;;  %v1256_v4 = vld [vmem:[%s4315_s3 + $0x40] sm:$0xff] }
  0xce   : > { %839 = vmatpush1.bf16.msra.mxu0 %v444_v21  ;;  %952 = vmatpush1.bf16.msra.mxu1 %v446_v22 }
  0xcf   : > { %840 = vmatprep.subr.bf16.mxu0 %v453_v25  ;;  %953 = vmatprep.subr.bf16.mxu1 %v455_v26  ;;  %v3266_v18 = vpop.trf.xlu0  ;;  %v1280_v25 = vld [vmem:[%s4315_s3 + $0x100] sm:$0xff]  ;;  %v1281_v26 = vld [vmem:[%s4315_s3 + $0x108] sm:$0xff] }
  0xd0   : > { %v1392_v32 = vpack.c.bf16 %v1281_v26, %v1280_v25  ;;  %v1307_v25 = vld [vmem:[%s4315_s3 + $0x1d8] sm:$0xff]  ;;  %v1380_v26 = vpack.c.bf16 %v1257_v5, %v1256_v4 }
  0xd2   : > { %841 = vmatpush1.bf16.msra.mxu0 %v452_v34  ;;  %954 = vmatpush1.bf16.msra.mxu1 %v454_v35  ;;  %v1251_v34 = vld [vmem:[%s4315_s3 + $0x18] sm:$0xff] }
  0xd3   : > { %842 = vmatprep.subr.bf16.mxu0 %v461_v38  ;;  %955 = vmatprep.subr.bf16.mxu1 %v463_v39  ;;  %v3274_v21 = vpop.trf.xlu0  ;;  %v1283_v38 = vld [vmem:[%s4315_s3 + $0x118] sm:$0xff]  ;;  %v1268_v39 = vld [vmem:[%s4315_s3 + $0xa0] sm:$0xff] }
  0xd4   : > { %667 = vmatmul.mubr.bf16.gmra.mrb[12].mxu0 %v3210_v46  ;;  %780 = vmatmul.mubr.bf16.gmra.mrb[12].mxu1 %v3210_v46  ;;  %v1393_v43 = vpack.c.bf16 %v1283_v38, %v1282_v37  ;;  %v1309_v37 = vld [vmem:[%s4315_s3 + $0x1e8] sm:$0xff] }
  0xd5   : > { %2173 = vmatprep.mubr.msk.bf16.mxu0 %vm554_vm1, %v3010_v14  ;;  %2182 = vmatprep.mubr.msk.bf16.mxu1 %vm554_vm1, %v3010_v14 }
  0xd6   : > { %843 = vmatpush1.bf16.msra.mxu0 %v460_v47  ;;  %956 = vmatpush1.bf16.msra.mxu1 %v462_v48  ;;  %v1386_v47 = vpack.c.bf16 %v1269_v40, %v1268_v39  ;;  %v1402_v48 = vpack.c.bf16 %v1301_v42, %v1300_v41  ;;  %v1260_v39 = vld [vmem:[%s4315_s3 + $0x60] sm:$0xff]  ;;  %v1261_v41 = vld [vmem:[%s4315_s3 + $0x68] sm:$0xff] }
  0xd7   : > { %844 = vmatprep.subr.bf16.mxu0 %v469_v52  ;;  %957 = vmatprep.subr.bf16.mxu1 %v471_v53  ;;  %v3282_v22 = vpop.trf.xlu0  ;;  %v1271_v52 = vld [vmem:[%s4315_s3 + $0xb8] sm:$0xff]  ;;  %v1302_v53 = vld [vmem:[%s4315_s3 + $0x1b0] sm:$0xff] }
  0xd8   : > { %v1387_v59 = vpack.c.bf16 %v1271_v52, %v1270_v50  ;;  %v1311_v50 = vld [vmem:[%s4315_s3 + $0x1f8] sm:$0xff] }
  0xda   : > { %845 = vmatpush1.bf16.msra.mxu0 %v468_v60  ;;  %958 = vmatpush1.bf16.msra.mxu1 %v470_v61  ;;  %v1403_v60 = vpack.c.bf16 %v1303_v54, %v1302_v53  ;;  %v1286_v61 = vld [vmem:[%s4315_s3 + $0x130] sm:$0xff]  ;;  %v1295_v54 = vld [vmem:[%s4315_s3 + $0x178] sm:$0xff] }
  0xdb   : > { %2186 = vmatprep.subr.msk.bf16.mxu0 %vm579_vm0, %v477_v62  ;;  %2195 = vmatprep.subr.msk.bf16.mxu1 %vm579_vm0, %v479_v0  ;;  %v1287_v62 = vld [vmem:[%s4315_s3 + $0x138] sm:$0xff]  ;;  %v1273_v0 = vld [vmem:[%s4315_s3 + $0xc8] sm:$0xff] }
  0xdc   : > { %677 = vmatmul.mubr.bf16.gmra.mrb[16].mxu0 %v3254_v6  ;;  %790 = vmatmul.mubr.bf16.gmra.mrb[16].mxu1 %v3254_v6  ;;  %v1395_v3 = vpack.c.bf16 %v1287_v62, %v1286_v61 }
  0xdd   : > { %2174 = vmatprep.mubr.msk.bf16.mxu0 %vm554_vm1, %v3012_v15  ;;  %2183 = vmatprep.mubr.msk.bf16.mxu1 %vm554_vm1, %v3012_v15 }
  0xde   : > { %847 = vmatpush1.bf16.msra.mxu0 %v593_v7  ;;  %960 = vmatpush1.bf16.msra.mxu1 %v599_v8  ;;  %v1388_v7 = vpack.c.bf16 %v1273_v0, %v1272_v63  ;;  %v1404_v8 = vpack.c.bf16 %v1305_v2, %v1304_v1 }
  0xdf   : > { %2207 = vmatprep.subr.bf16.mxu0 %v1384_v9  ;;  %2271 = vmatprep.subr.bf16.mxu1 %v1400_v17  ;;  %v1289_v9 = vld [vmem:[%s4315_s3 + $0x148] sm:$0xff]  ;;  %v1274_v17 = vld [vmem:[%s4315_s3 + $0xd0] sm:$0xff] }
  0xe0   : > { %v1389_v29 = vpack.c.bf16 %v1275_v23, %v1274_v17 }
  0xe4   : > { %687 = vmatmul.mubr.bf16.gmra.mrb[20].mxu0 %v3266_v18  ;;  %800 = vmatmul.mubr.bf16.gmra.mrb[20].mxu1 %v3266_v18 }
  0xe5   : > { %2175 = vmatprep.mubr.msk.bf16.mxu0 %vm554_vm1, %v3014_v16  ;;  %2184 = vmatprep.mubr.msk.bf16.mxu1 %vm554_vm1, %v3014_v16 }
  0xec   : > { %697 = vmatmul.mubr.bf16.gmra.mrb[24].mxu0 %v3274_v21  ;;  %810 = vmatmul.mubr.bf16.gmra.mrb[24].mxu1 %v3274_v21 }
  0xed   : > { %2176 = vmatprep.mubr.msk.bf16.mxu0 %vm554_vm1, %v3022_v19  ;;  %2185 = vmatprep.mubr.msk.bf16.mxu1 %vm554_vm1, %v3022_v19 }
  0xf4   : > { %707 = vmatmul.mubr.bf16.gmra.mrb[28].mxu0 %v3282_v22  ;;  %820 = vmatmul.mubr.bf16.gmra.mrb[28].mxu1 %v3282_v22 }
  0xf5   : > { %2187 = vmatprep.mubr.msk.bf16.mxu0 %vm554_vm1, %v2998_v10  ;;  %2196 = vmatprep.mubr.msk.bf16.mxu1 %vm554_vm1, %v2998_v10  ;;  %v1266_v10 = vld [vmem:[%s4315_s3 + $0x90] sm:$0xff] }
  0xf6   : > { %v1385_v35 = vpack.c.bf16 %v1267_v27, %v1266_v10  ;;  %v1258_v27 = vld [vmem:[%s4315_s3 + $0x50] sm:$0xff] }
  0xfc   : > { %863 = vmatmul.mubr.bf16.vlgmr.msra.gmra.mrb[32].mxu0 %v3051_v31  ;;  %976 = vmatmul.mubr.bf16.vlgmr.msra.gmra.mrb[32].mxu1 %v3051_v31  ;;  %v1377_v31 = vpack.c.bf16 %v1251_v34, %v1250_v33  ;;  %v1291_v33 = vld [vmem:[%s4315_s3 + $0x158] sm:$0xff]  ;;  %v1276_v34 = vld [vmem:[%s4315_s3 + $0xe0] sm:$0xff] }
  0xfd   : > { %2188 = vmatprep.mubr.msk.bf16.mxu0 %vm554_vm1, %v3004_v11  ;;  %2197 = vmatprep.mubr.msk.bf16.mxu1 %vm554_vm1, %v3004_v11  ;;  %v1284_v11 = vld [vmem:[%s4315_s3 + $0x120] sm:$0xff] }
  0xfe   : > { %2208 = vmatpush3.bf16.msra.mxu0 %v1376_v30  ;;  %2272 = vmatpush3.bf16.msra.mxu1 %v1392_v32  ;;  %v1394_v56 = vpack.c.bf16 %v1285_v49, %v1284_v11  ;;  %v1405_v30 = vpack.c.bf16 %v1307_v25, %v1306_v24  ;;  %v1290_v32 = vld [vmem:[%s4315_s3 + $0x150] sm:$0xff]  ;;  %v1263_v49 = vld [vmem:[%s4315_s3 + $0x78] sm:$0xff]  ;;  %v3566_v25 = vld [vmem:[%s4315_s3 + $0x300] sm:$0xff] }
  0xff   : > { %2209 = vmatprep.subr.bf16.mxu0 %v1385_v35  ;;  %2273 = vmatprep.subr.bf16.mxu1 %v1401_v36  ;;  %v1277_v35 = vld [vmem:[%s4315_s3 + $0xe8] sm:$0xff]  ;;  %v1308_v36 = vld [vmem:[%s4315_s3 + $0x1e0] sm:$0xff]  ;;  %v1397_v38 = vpack.c.bf16 %v1291_v33, %v1290_v32  ;;  %v3583_v32 = vld [vmem:[%s4315_s3 + $0x298] sm:$0xff] }
 0x100   : > { %v1390_v40 = vpack.c.bf16 %v1277_v35, %v1276_v34  ;;  %v1406_v42 = vpack.c.bf16 %v1309_v37, %v1308_v36  ;;  %v3588_v33 = vld [vmem:[%s4315_s3 + $0x210] sm:$0xff]  ;;  %v3597_v37 = vld [vmem:[%s4315_s3 + $0x218] sm:$0xff] }
 0x102   : > { %2210 = vmatpush3.bf16.msra.mxu0 %v1377_v31  ;;  %2274 = vmatpush3.bf16.msra.mxu1 %v1393_v43  ;;  %v1293_v31 = vld [vmem:[%s4315_s3 + $0x168] sm:$0xff]  ;;  %v1382_v43 = vpack.c.bf16 %v1261_v41, %v1260_v39 }
 0x103   : > { %2211 = vmatprep.subr.bf16.mxu0 %v1386_v47  ;;  %2275 = vmatprep.subr.bf16.mxu1 %v1402_v48  ;;  %v1279_v47 = vld [vmem:[%s4315_s3 + $0xf8] sm:$0xff]  ;;  %v1310_v48 = vld [vmem:[%s4315_s3 + $0x1f0] sm:$0xff] }
 0x104   : > { %873 = vmatmul.mubr.bf16.gmra.mrb[36].mxu0 %v3098_v51  ;;  %986 = vmatmul.mubr.bf16.gmra.mrb[36].mxu1 %v3098_v51  ;;  %v1379_v51 = vpack.c.bf16 %v1255_v58, %v1254_v57  ;;  %v1391_v11 = vpack.c.bf16 %v1279_v47, %v1278_v45  ;;  %v1407_v53 = vpack.c.bf16 %v1311_v50, %v1310_v48  ;;  %v1329_v57 = vld [vmem:[%s4315_s3 + $0x288] sm:$0xff]  ;;  %v3622_v48 = vld [vmem:[%s4315_s3 + $0x2a0] sm:$0xff] }
 0x105   : > { %2189 = vmatprep.mubr.msk.bf16.mxu0 %vm554_vm1, %v3006_v12  ;;  %2198 = vmatprep.mubr.msk.bf16.mxu1 %vm554_vm1, %v3006_v12  ;;  %v1288_v12 = vld [vmem:[%s4315_s3 + $0x140] sm:$0xff] }
 0x106   : > { %2212 = vmatpush3.bf16.msra.mxu0 %v1378_v55  ;;  %2276 = vmatpush3.bf16.msra.mxu1 %v1394_v56  ;;  %v1396_v10 = vpack.c.bf16 %v1289_v9, %v1288_v12  ;;  %v1328_v56 = vld [vmem:[%s4315_s3 + $0x280] sm:$0xff]  ;;  %v3559_v12 = vld [vmem:[%s4315_s3 + $0x208] sm:$0xff] }
 0x107   : > { %2213 = vmatprep.subr.bf16.mxu0 %v1387_v59  ;;  %2277 = vmatprep.subr.bf16.mxu1 %v1403_v60  ;;  %v1416_v58 = vpack.c.bf16 %v1329_v57, %v1328_v56  ;;  %v1360_v59 = vld [vmem:[%s4315_s3 + $0x380] sm:$0xff] }
 0x10a   : > { %2214 = vmatpush3.bf16.msra.mxu0 %v1379_v51  ;;  %2278 = vmatpush3.bf16.msra.mxu1 %v1395_v3 }
 0x10b   : > { %2215 = vmatprep.subr.bf16.mxu0 %v1388_v7  ;;  %2279 = vmatprep.subr.bf16.mxu1 %v1404_v8  ;;  %v3554_v8 = vld [vmem:[%s4315_s3 + $0x200] sm:$0xff] }
 0x10c   : > { %883 = vmatmul.mubr.bf16.gmra.mrb[40].mxu0 %v3154_v20  ;;  %996 = vmatmul.mubr.bf16.gmra.mrb[40].mxu1 %v3154_v20  ;;  %v1381_v20 = vpack.c.bf16 %v1259_v28, %v1258_v27  ;;  %v1408_v36 = vpack.c.bf16 %v3559_v12, %v3554_v8 }
 0x10d   : > { %2190 = vmatprep.mubr.msk.bf16.mxu0 %vm554_vm1, %v3008_v13  ;;  %2199 = vmatprep.mubr.msk.bf16.mxu1 %vm554_vm1, %v3008_v13  ;;  %v1292_v13 = vld [vmem:[%s4315_s3 + $0x160] sm:$0xff] }
 0x10e   : > { %2216 = vmatpush3.bf16.msra.mxu0 %v1380_v26  ;;  %2280 = vmatpush3.bf16.msra.mxu1 %v1396_v10  ;;  %v1398_v44 = vpack.c.bf16 %v1293_v31, %v1292_v13  ;;  %v3571_v26 = vld [vmem:[%s4315_s3 + $0x308] sm:$0xff]  ;;  %v3612_v13 = vld [vmem:[%s4315_s3 + $0x310] sm:$0xff]  ;;  %v3617_v31 = vld [vmem:[%s4315_s3 + $0x318] sm:$0xff] }
 0x10f   : > { %2217 = vmatprep.subr.bf16.mxu0 %v1389_v29  ;;  %2281 = vmatprep.subr.bf16.mxu1 %v1405_v30  ;;  %v3578_v30 = vld [vmem:[%s4315_s3 + $0x290] sm:$0xff]  ;;  %v1424_v50 = vpack.c.bf16 %v3571_v26, %v3566_v25 }
 0x110   : > { %v3684_v26 = vld [vmem:[%s4315_s3 + $0x2b0] sm:$0xff] }
 0x112   : > { %2218 = vmatpush3.bf16.msra.mxu0 %v1381_v20  ;;  %2282 = vmatpush3.bf16.msra.mxu1 %v1397_v38  ;;  %v3602_v20 = vld [vmem:[%s4315_s3 + $0x390] sm:$0xff]  ;;  %v3607_v38 = vld [vmem:[%s4315_s3 + $0x398] sm:$0xff] }
 0x113   : > { %2219 = vmatprep.subr.bf16.mxu0 %v1390_v40  ;;  %2283 = vmatprep.subr.bf16.mxu1 %v1406_v42 }
 0x114   : > { %893 = vmatmul.mubr.bf16.gmra.mrb[44].mxu0 %v3210_v46  ;;  %1006 = vmatmul.mubr.bf16.gmra.mrb[44].mxu1 %v3210_v46  ;;  %v1262_v46 = vld [vmem:[%s4315_s3 + $0x70] sm:$0xff] }
 0x115   : > { %2191 = vmatprep.mubr.msk.bf16.mxu0 %vm554_vm1, %v3010_v14  ;;  %2200 = vmatprep.mubr.msk.bf16.mxu1 %vm554_vm1, %v3010_v14  ;;  %v1383_v52 = vpack.c.bf16 %v1263_v49, %v1262_v46  ;;  %v1294_v14 = vld [vmem:[%s4315_s3 + $0x170] sm:$0xff] }
 0x116   : > { %2220 = vmatpush3.bf16.msra.mxu0 %v1382_v43  ;;  %2284 = vmatpush3.bf16.msra.mxu1 %v1398_v44  ;;  %v1399_v55 = vpack.c.bf16 %v1295_v54, %v1294_v14  ;;  %v3641_v14 = vld [vmem:[%s4315_s3 + $0x228] sm:$0xff] }
 0x117   : > { %2221 = vmatprep.subr.bf16.mxu0 %v1391_v11  ;;  %2285 = vmatprep.subr.bf16.mxu1 %v1407_v53  ;;  %v3627_v11 = vld [vmem:[%s4315_s3 + $0x2a8] sm:$0xff]  ;;  %v3636_v53 = vld [vmem:[%s4315_s3 + $0x220] sm:$0xff] }
 0x118   : > { %v1410_v12 = vpack.c.bf16 %v3641_v14, %v3636_v53 }
 0x11a   : > { %2222 = vmatpush3.bf16.msra.mxu0 %v1383_v52  ;;  %2286 = vmatpush3.bf16.msra.mxu1 %v1399_v55  ;;  %v1417_v52 = vpack.c.bf16 %v3583_v32, %v3578_v30  ;;  %v3698_v30 = vld [vmem:[%s4315_s3 + $0x230] sm:$0xff]  ;;  %v3703_v32 = vld [vmem:[%s4315_s3 + $0x238] sm:$0xff] }
 0x11b   : > { %2335 = vmatprep.subr.bf16.mxu0 %v1416_v58  ;;  %v1409_v58 = vpack.c.bf16 %v3597_v37, %v3588_v33  ;;  %v1366_v37 = vld [vmem:[%s4315_s3 + $0x3b0] sm:$0xff] }
 0x11c   : > { %903 = vmatmul.mubr.bf16.gmra.mrb[48].mxu0 %v3254_v6  ;;  %1016 = vmatmul.mubr.bf16.gmra.mrb[48].mxu1 %v3254_v6  ;;  %v1361_v6 = vld [vmem:[%s4315_s3 + $0x388] sm:$0xff] }
 0x11d   : > { %2192 = vmatprep.mubr.msk.bf16.mxu0 %vm554_vm1, %v3012_v15  ;;  %2201 = vmatprep.mubr.msk.bf16.mxu1 %vm554_vm1, %v3012_v15  ;;  %v1432_v60 = vpack.c.bf16 %v1361_v6, %v1360_v59  ;;  %v482_v15 = vlaneseq  ;;  %v1433_v59 = vpack.c.bf16 %v3607_v38, %v3602_v20  ;;  %v3650_v6 = vld [vmem:[%s4315_s3 + $0x3a0] sm:$0xff]  ;;  %v1367_v20 = vld [vmem:[%s4315_s3 + $0x3b8] sm:$0xff] }
 0x11f   : > { %2399 = vmatprep.subr.bf16.mxu1 %v1432_v60  ;;  %v3655_v60 = vld [vmem:[%s4315_s3 + $0x3a8] sm:$0xff] }
 0x120   : > { %v1434_v25 = vpack.c.bf16 %v3655_v60, %v3650_v6  ;;  %v1368_v60 = vld [vmem:[%s4315_s3 + $0x3c0] sm:$0xff] }
 0x124   : > { %913 = vmatmul.mubr.bf16.gmra.mrb[52].mxu0 %v3266_v18  ;;  %1026 = vmatmul.mubr.bf16.gmra.mrb[52].mxu1 %v3266_v18  ;;  %v3526_v18 = vshrl.u32 %v482_v15, 7 }
 0x125   : > { %2193 = vmatprep.mubr.msk.bf16.mxu0 %vm554_vm1, %v3014_v16  ;;  %2202 = vmatprep.mubr.msk.bf16.mxu1 %vm554_vm1, %v3014_v16 }
 0x126   : > { %v484_v61 = vsub.s32 0, %v3526_v18  ;;  %v492_v16 = vsub.s32 2, %v3526_v18  ;;  %v488_v62 = vsub.s32 1, %v3526_v18 }
 0x12c   : > { %923 = vmatmul.mubr.bf16.gmra.mrb[56].mxu0 %v3274_v21  ;;  %1036 = vmatmul.mubr.bf16.gmra.mrb[56].mxu1 %v3274_v21  ;;  %v3533_v21 = vld [vmem:[%s4314_s2] sm:$0xff] }
 0x12d   : > { %2194 = vmatprep.mubr.msk.bf16.mxu0 %vm554_vm1, %v3022_v19  ;;  %2203 = vmatprep.mubr.msk.bf16.mxu1 %vm554_vm1, %v3022_v19  ;;  %v496_v19 = vsub.s32 3, %v3526_v18  ;;  %v3538_v63 = vrot.slane %v3533_v21, %v484_v61  ;;  %v3544_v0 = vrot.slane %v3533_v21, %v488_v62 }
 0x12f   : > { %v3547_v1 = vrot.slane %v3533_v21, %v496_v19  ;;  %v1425_v19 = vpack.c.bf16 %v3617_v31, %v3612_v13  ;;  %v3719_v13 = vld [vmem:[%s4315_s3 + $0x338] sm:$0xff] }
 0x134   : > { %933 = vmatmul.mubr.bf16.gmra.mrb[60].mxu0 %v3282_v22  ;;  %1046 = vmatmul.mubr.bf16.gmra.mrb[60].mxu1 %v3282_v22  ;;  %v3541_v22 = vrot.slane %v3533_v21, %v492_v16 }
 0x18f   : > { %v638_v2 = vpop.f32.mrb[0].mxu0  ;;  %v751_v51 = vpop.f32.mrb[0].mxu1 }
 0x190   : > { %v639_v3 = vadd.f32 %v638_v2, %v3538_v63  ;;  %v752_v4 = vadd.f32 %v751_v51, %v3541_v22  ;;  %v640_v5 = vpop.f32.mrb[1].mxu0  ;;  %v753_v7 = vpop.f32.mrb[1].mxu1  ;;  %v1418_v2 = vpack.c.bf16 %v3627_v11, %v3622_v48  ;;  %v3666_v51 = vld [vmem:[%s4315_s3 + $0x320] sm:$0xff]  ;;  %v3733_v48 = vld [vmem:[%s4315_s3 + $0x2c8] sm:$0xff] }
 0x191   : > { %v641_v9 = vadd.f32 %v640_v5, %v3544_v0  ;;  %v754_v17 = vadd.f32 %v753_v7, %v3547_v1  ;;  %v642_v23 = vpop.f32.mrb[2].mxu0  ;;  %v755_v24 = vpop.f32.mrb[2].mxu1 }
 0x192   : > { %v643_v10 = vadd.f32 %v642_v23, %v3538_v63  ;;  %v756_v27 = vadd.f32 %v755_v24, %v3541_v22  ;;  %v644_v28 = vpop.f32.mrb[3].mxu0  ;;  %v757_v29 = vpop.f32.mrb[3].mxu1  ;;  %v1056_v39 = vmax.f32 %v639_v3, 0.0  ;;  %v1058_v40 = vmax.f32 %v752_v4, 0.0  ;;  %v3671_v3 = vld [vmem:[%s4315_s3 + $0x328] sm:$0xff] }
 0x193   : > { %v645_v34 = vadd.f32 %v644_v28, %v3544_v0  ;;  %v758_v35 = vadd.f32 %v757_v29, %v3547_v1  ;;  %v1057_v43 = vmax.f32 %v641_v9, 0.0  ;;  %v1059_v44 = vmax.f32 %v754_v17, 0.0  ;;  %v3693_v29 = vld [vmem:[%s4315_s3 + $0x2b8] sm:$0xff] }
 0x194   : > { %v1064_v41 = vmax.f32 %v643_v10, 0.0  ;;  %v1066_v42 = vmax.f32 %v756_v27, 0.0  ;;  %v1426_v28 = vpack.c.bf16 %v3671_v3, %v3666_v51 }
 0x195   : > { %v1065_v45 = vmax.f32 %v645_v34, 0.0  ;;  %v1067_v47 = vmax.f32 %v758_v35, 0.0 }
 0x196   : > { %v1184_v46 = vpack.c.bf16 %v1064_v41, %v1056_v39  ;;  %v1186_v49 = vpack.c.bf16 %v1066_v42, %v1058_v40  ;;  %v3714_v42 = vld [vmem:[%s4315_s3 + $0x330] sm:$0xff] }
 0x197   : > { %v1185_v54 = vpack.c.bf16 %v1065_v45, %v1057_v43  ;;  %v1187_v55 = vpack.c.bf16 %v1067_v47, %v1059_v44  ;;  %v648_v56 = vpop.f32.mrb[4].mxu0  ;;  %v761_v57 = vpop.f32.mrb[4].mxu1  ;;  %v1419_v44 = vpack.c.bf16 %v3693_v29, %v3684_v26  ;;  %v1411_v45 = vpack.c.bf16 %v3703_v32, %v3698_v30  ;;  %v3728_v47 = vld [vmem:[%s4315_s3 + $0x2c0] sm:$0xff]  ;;  %v3784_v26 = vld [vmem:[%s4315_s3 + $0x2d8] sm:$0xff] }
 0x198   : > { %v649_v15 = vadd.f32 %v648_v56, %v3538_v63  ;;  %v762_v61 = vadd.f32 %v761_v57, %v3541_v22  ;;  %v650_v16 = vpop.f32.mrb[5].mxu0  ;;  %v763_v62 = vpop.f32.mrb[5].mxu1 }
 0x199   : > { %v651_v4 = vadd.f32 %v650_v16, %v3544_v0  ;;  %v764_v5 = vadd.f32 %v763_v62, %v3547_v1  ;;  %v652_v7 = vpop.f32.mrb[6].mxu0  ;;  %v765_v8 = vpop.f32.mrb[6].mxu1  ;;  %1479 = vmatprep.mubr.bf16.mxu0 %v1185_v54  ;;  %1576 = vmatprep.mubr.bf16.mxu1 %v1187_v55  ;;  %v3738_v54 = vld [vmem:[%s4315_s3 + $0x240] sm:$0xff]  ;;  %v3743_v55 = vld [vmem:[%s4315_s3 + $0x248] sm:$0xff] }
 0x19a   : > { %v653_v9 = vadd.f32 %v652_v7, %v3538_v63  ;;  %v766_v17 = vadd.f32 %v765_v8, %v3541_v22  ;;  %v654_v23 = vpop.f32.mrb[7].mxu0  ;;  %v767_v24 = vpop.f32.mrb[7].mxu1  ;;  %1480 = vmatmul.mubr.bf16.vlgmr.msra.gmra.mrb[64].mxu0 %v1184_v46  ;;  %1577 = vmatmul.mubr.bf16.vlgmr.msra.gmra.mrb[64].mxu1 %v1186_v49  ;;  %v1072_v33 = vmax.f32 %v649_v15, 0.0  ;;  %v1074_v34 = vmax.f32 %v762_v61, 0.0  ;;  %v1369_v15 = vld [vmem:[%s4315_s3 + $0x3c8] sm:$0xff]  ;;  %v3766_v8 = vld [vmem:[%s4315_s3 + $0x340] sm:$0xff] }
 0x19b   : > { %v655_v10 = vadd.f32 %v654_v23, %v3544_v0  ;;  %v768_v27 = vadd.f32 %v767_v24, %v3547_v1  ;;  %2336 = vmatpush3.bf16.msra.mxu0 %v1408_v36  ;;  %2400 = vmatpush3.bf16.msra.mxu1 %v1424_v50  ;;  %v1073_v38 = vmax.f32 %v651_v4, 0.0  ;;  %v1075_v39 = vmax.f32 %v764_v5, 0.0  ;;  %v1353_v24 = vld [vmem:[%s4315_s3 + $0x348] sm:$0xff] }
 0x19c   : > { %v1080_v35 = vmax.f32 %v653_v9, 0.0  ;;  %v1082_v36 = vmax.f32 %v766_v17, 0.0  ;;  %2337 = vmatprep.subr.bf16.mxu0 %v1417_v52  ;;  %2401 = vmatprep.subr.bf16.mxu1 %v1433_v59  ;;  %v1435_v52 = vpack.c.bf16 %v1367_v20, %v1366_v37  ;;  %v1412_v7 = vpack.c.bf16 %v3743_v55, %v3738_v54  ;;  %v1371_v37 = vld [vmem:[%s4315_s3 + $0x3d8] sm:$0xff]  ;;  %v1342_v54 = vld [vmem:[%s4315_s3 + $0x2f0] sm:$0xff] }
 0x19d   : > { %v1081_v40 = vmax.f32 %v655_v10, 0.0  ;;  %v1083_v41 = vmax.f32 %v768_v27, 0.0  ;;  %v1436_v23 = vpack.c.bf16 %v1369_v15, %v1368_v60  ;;  %v1343_v55 = vld [vmem:[%s4315_s3 + $0x2f8] sm:$0xff] }
 0x19e   : > { %v1192_v31 = vpack.c.bf16 %v1080_v35, %v1072_v33  ;;  %v1194_v43 = vpack.c.bf16 %v1082_v36, %v1074_v34  ;;  %v1370_v36 = vld [vmem:[%s4315_s3 + $0x3d0] sm:$0xff] }
 0x19f   : > { %v1193_v11 = vpack.c.bf16 %v1081_v40, %v1073_v38  ;;  %v1195_v46 = vpack.c.bf16 %v1083_v41, %v1075_v39  ;;  %v658_v49 = vpop.f32.mrb[8].mxu0  ;;  %v771_v50 = vpop.f32.mrb[8].mxu1  ;;  %2338 = vmatpush3.bf16.msra.mxu0 %v1409_v58  ;;  %2402 = vmatpush3.bf16.msra.mxu1 %v1425_v19  ;;  %v1427_v58 = vpack.c.bf16 %v3719_v13, %v3714_v42  ;;  %v3808_v41 = vld [vmem:[%s4315_s3 + $0x350] sm:$0xff]  ;;  %v3813_v42 = vld [vmem:[%s4315_s3 + $0x358] sm:$0xff] }
 0x1a0   : > { %v659_v56 = vadd.f32 %v658_v49, %v3538_v63  ;;  %v772_v57 = vadd.f32 %v771_v50, %v3541_v22  ;;  %v660_v59 = vpop.f32.mrb[9].mxu0  ;;  %v773_v6 = vpop.f32.mrb[9].mxu1  ;;  %2339 = vmatprep.subr.bf16.mxu0 %v1418_v2  ;;  %2403 = vmatprep.subr.bf16.mxu1 %v1434_v25  ;;  %v1420_v2 = vpack.c.bf16 %v3733_v48, %v3728_v47  ;;  %v3779_v25 = vld [vmem:[%s4315_s3 + $0x2d0] sm:$0xff]  ;;  %v3823_v48 = vld [vmem:[%s4315_s3 + $0x2e0] sm:$0xff] }
 0x1a1   : > { %v661_v61 = vadd.f32 %v660_v59, %v3544_v0  ;;  %v774_v16 = vadd.f32 %v773_v6, %v3547_v1  ;;  %v662_v62 = vpop.f32.mrb[10].mxu0  ;;  %v775_v19 = vpop.f32.mrb[10].mxu1  ;;  %1487 = vmatprep.mubr.bf16.mxu0 %v1193_v11  ;;  %1584 = vmatprep.mubr.bf16.mxu1 %v1195_v46  ;;  %v1428_v39 = vpack.c.bf16 %v1353_v24, %v3766_v8  ;;  %v3828_v11 = vld [vmem:[%s4315_s3 + $0x2e8] sm:$0xff]  ;;  %v1372_v50 = vld [vmem:[%s4315_s3 + $0x3e0] sm:$0xff] }
 0x1a2   : > { %v663_v51 = vadd.f32 %v662_v62, %v3538_v63  ;;  %v776_v3 = vadd.f32 %v775_v19, %v3541_v22  ;;  %v664_v4 = vpop.f32.mrb[11].mxu0  ;;  %v777_v5 = vpop.f32.mrb[11].mxu1  ;;  %1488 = vmatmul.mubr.bf16.gmra.mrb[68].mxu0 %v1192_v31  ;;  %1585 = vmatmul.mubr.bf16.gmra.mrb[68].mxu1 %v1194_v43  ;;  %v1088_v10 = vmax.f32 %v659_v56, 0.0  ;;  %v1090_v27 = vmax.f32 %v772_v57, 0.0  ;;  %v1324_v19 = vld [vmem:[%s4315_s3 + $0x260] sm:$0xff]  ;;  %v1357_v8 = vld [vmem:[%s4315_s3 + $0x368] sm:$0xff] }
 0x1a3   : > { %v665_v9 = vadd.f32 %v664_v4, %v3544_v0  ;;  %v778_v17 = vadd.f32 %v777_v5, %v3547_v1  ;;  %2340 = vmatpush3.bf16.msra.mxu0 %v1410_v12  ;;  %2404 = vmatpush3.bf16.msra.mxu1 %v1426_v28  ;;  %v3789_v12 = vld [vmem:[%s4315_s3 + $0x250] sm:$0xff]  ;;  %v3794_v28 = vld [vmem:[%s4315_s3 + $0x258] sm:$0xff]  ;;  %v1089_v29 = vmax.f32 %v661_v61, 0.0  ;;  %v1091_v33 = vmax.f32 %v774_v16, 0.0  ;;  %v1356_v5 = vld [vmem:[%s4315_s3 + $0x360] sm:$0xff] }
 0x1a4   : > { %v1096_v53 = vmax.f32 %v663_v51, 0.0  ;;  %v1098_v14 = vmax.f32 %v776_v3, 0.0  ;;  %2341 = vmatprep.subr.bf16.mxu0 %v1419_v44  ;;  %2405 = vmatprep.subr.bf16.mxu1 %v1435_v52  ;;  %v1421_v40 = vpack.c.bf16 %v3784_v26, %v3779_v25  ;;  %v1413_v47 = vpack.c.bf16 %v3794_v28, %v3789_v12  ;;  %v1373_v52 = vld [vmem:[%s4315_s3 + $0x3e8] sm:$0xff] }
 0x1a5   : > { %v1097_v34 = vmax.f32 %v665_v9, 0.0  ;;  %v1099_v35 = vmax.f32 %v778_v17, 0.0  ;;  %v1422_v62 = vpack.c.bf16 %v3828_v11, %v3823_v48  ;;  %v1325_v3 = vld [vmem:[%s4315_s3 + $0x268] sm:$0xff]  ;;  %v1438_v4 = vpack.c.bf16 %v1373_v52, %v1372_v50 }
 0x1a6   : > { %v1200_v20 = vpack.c.bf16 %v1096_v53, %v1088_v10  ;;  %v1202_v38 = vpack.c.bf16 %v1098_v14, %v1090_v27  ;;  %v1374_v27 = vld [vmem:[%s4315_s3 + $0x3f0] sm:$0xff]  ;;  %v1375_v53 = vld [vmem:[%s4315_s3 + $0x3f8] sm:$0xff]  ;;  %v1414_v28 = vpack.c.bf16 %v1325_v3, %v1324_v19 }
 0x1a7   : > { %v1201_v13 = vpack.c.bf16 %v1097_v34, %v1089_v29  ;;  %v1203_v31 = vpack.c.bf16 %v1099_v35, %v1091_v33  ;;  %v668_v43 = vpop.f32.mrb[12].mxu0  ;;  %v781_v44 = vpop.f32.mrb[12].mxu1  ;;  %2342 = vmatpush3.bf16.msra.mxu0 %v1411_v45  ;;  %2406 = vmatpush3.bf16.msra.mxu1 %v1427_v58  ;;  %v1437_v45 = vpack.c.bf16 %v1371_v37, %v1370_v36 }
 0x1a8   : > { %v669_v46 = vadd.f32 %v668_v43, %v3538_v63  ;;  %v782_v49 = vadd.f32 %v781_v44, %v3541_v22  ;;  %v670_v30 = vpop.f32.mrb[13].mxu0  ;;  %v783_v32 = vpop.f32.mrb[13].mxu1  ;;  %2343 = vmatprep.subr.bf16.mxu0 %v1420_v2  ;;  %2407 = vmatprep.subr.bf16.mxu1 %v1436_v23  ;;  %v1429_v58 = vpack.c.bf16 %v3813_v42, %v3808_v41  ;;  %v1359_v43 = vld [vmem:[%s4315_s3 + $0x378] sm:$0xff] }
 0x1a9   : > { %v671_v56 = vadd.f32 %v670_v30, %v3544_v0  ;;  %v784_v57 = vadd.f32 %v783_v32, %v3547_v1  ;;  %v672_v59 = vpop.f32.mrb[14].mxu0  ;;  %v785_v6 = vpop.f32.mrb[14].mxu1  ;;  %1495 = vmatprep.mubr.bf16.mxu0 %v1201_v13  ;;  %1592 = vmatprep.mubr.bf16.mxu1 %v1203_v31  ;;  %v1430_v29 = vpack.c.bf16 %v1357_v8, %v1356_v5  ;;  %v1358_v31 = vld [vmem:[%s4315_s3 + $0x370] sm:$0xff] }
 0x1aa   : > { %v673_v60 = vadd.f32 %v672_v59, %v3538_v63  ;;  %v786_v15 = vadd.f32 %v785_v6, %v3541_v22  ;;  %v674_v61 = vpop.f32.mrb[15].mxu0  ;;  %v787_v16 = vpop.f32.mrb[15].mxu1  ;;  %1496 = vmatmul.mubr.bf16.gmra.mrb[72].mxu0 %v1200_v20  ;;  %1593 = vmatmul.mubr.bf16.gmra.mrb[72].mxu1 %v1202_v38  ;;  %v1104_v9 = vmax.f32 %v669_v46, 0.0  ;;  %v1106_v17 = vmax.f32 %v782_v49, 0.0  ;;  %v1326_v20 = vld [vmem:[%s4315_s3 + $0x270] sm:$0xff]  ;;  %v1327_v38 = vld [vmem:[%s4315_s3 + $0x278] sm:$0xff] }
 0x1ab   : > { %v675_v2 = vadd.f32 %v674_v61, %v3544_v0  ;;  %v788_v51 = vadd.f32 %v787_v16, %v3547_v1  ;;  %2344 = vmatpush3.bf16.msra.mxu0 %v1412_v7  ;;  %2408 = vmatpush3.bf16.msra.mxu1 %v1428_v39  ;;  %v1105_v7 = vmax.f32 %v671_v56, 0.0  ;;  %v1107_v25 = vmax.f32 %v784_v57, 0.0 }
 0x1ac   : > { %v1112_v23 = vmax.f32 %v673_v60, 0.0  ;;  %v1114_v24 = vmax.f32 %v786_v15, 0.0  ;;  %2345 = vmatprep.subr.bf16.mxu0 %v1421_v40  ;;  %2409 = vmatprep.subr.bf16.mxu1 %v1437_v45  ;;  %v1423_v37 = vpack.c.bf16 %v1343_v55, %v1342_v54  ;;  %v1439_v13 = vpack.c.bf16 %v1375_v53, %v1374_v27 }
 0x1ad   : > { %v1113_v26 = vmax.f32 %v675_v2, 0.0  ;;  %v1115_v10 = vmax.f32 %v788_v51, 0.0  ;;  %v1415_v45 = vpack.c.bf16 %v1327_v38, %v1326_v20  ;;  %v1431_v56 = vpack.c.bf16 %v1359_v43, %v1358_v31 }
 0x1ae   : > { %v1208_v14 = vpack.c.bf16 %v1112_v23, %v1104_v9  ;;  %v1210_v12 = vpack.c.bf16 %v1114_v24, %v1106_v17 }
 0x1af   : > { %v1209_v33 = vpack.c.bf16 %v1113_v26, %v1105_v7  ;;  %v1211_v34 = vpack.c.bf16 %v1115_v10, %v1107_v25  ;;  %v678_v35 = vpop.f32.mrb[16].mxu0  ;;  %v791_v36 = vpop.f32.mrb[16].mxu1  ;;  %2346 = vmatpush3.bf16.msra.mxu0 %v1413_v47  ;;  %2410 = vmatpush3.bf16.msra.mxu1 %v1429_v58 }
 0x1b0   : > { %v679_v39 = vadd.f32 %v678_v35, %v3538_v63  ;;  %v792_v40 = vadd.f32 %v791_v36, %v3541_v22  ;;  %v680_v41 = vpop.f32.mrb[17].mxu0  ;;  %v793_v42 = vpop.f32.mrb[17].mxu1  ;;  %2347 = vmatprep.subr.bf16.mxu0 %v1422_v62  ;;  %2411 = vmatprep.subr.bf16.mxu1 %v1438_v4 }
 0x1b1   : > { %v681_v44 = vadd.f32 %v680_v41, %v3544_v0  ;;  %v794_v47 = vadd.f32 %v793_v42, %v3547_v1  ;;  %v682_v48 = vpop.f32.mrb[18].mxu0  ;;  %v795_v11 = vpop.f32.mrb[18].mxu1  ;;  %1503 = vmatprep.mubr.bf16.mxu0 %v1209_v33  ;;  %1600 = vmatprep.mubr.bf16.mxu1 %v1211_v34 }
 0x1b2   : > { %v683_v46 = vadd.f32 %v682_v48, %v3538_v63  ;;  %v796_v49 = vadd.f32 %v795_v11, %v3541_v22  ;;  %v684_v30 = vpop.f32.mrb[19].mxu0  ;;  %v797_v32 = vpop.f32.mrb[19].mxu1  ;;  %1504 = vmatmul.mubr.bf16.gmra.mrb[76].mxu0 %v1208_v14  ;;  %1601 = vmatmul.mubr.bf16.gmra.mrb[76].mxu1 %v1210_v12  ;;  %v1120_v57 = vmax.f32 %v679_v39, 0.0  ;;  %v1122_v59 = vmax.f32 %v792_v40, 0.0 }
 0x1b3   : > { %v685_v50 = vadd.f32 %v684_v30, %v3544_v0  ;;  %v798_v52 = vadd.f32 %v797_v32, %v3547_v1  ;;  %2348 = vmatpush3.bf16.msra.mxu0 %v1414_v28  ;;  %2412 = vmatpush3.bf16.msra.mxu1 %v1430_v29  ;;  %v1121_v60 = vmax.f32 %v681_v44, 0.0  ;;  %v1123_v15 = vmax.f32 %v794_v47, 0.0 }
 0x1b4   : > { %v1128_v6 = vmax.f32 %v683_v46, 0.0  ;;  %v1130_v58 = vmax.f32 %v796_v49, 0.0  ;;  %2349 = vmatprep.subr.bf16.mxu0 %v1423_v37  ;;  %2413 = vmatprep.subr.bf16.mxu1 %v1439_v13 }
 0x1b5   : > { %v1129_v61 = vmax.f32 %v685_v50, 0.0  ;;  %v1131_v16 = vmax.f32 %v798_v52, 0.0  ;;  %v500_v52 = vsub.s32 4, %v3526_v18 }
 0x1b6   : > { %v1216_v62 = vpack.c.bf16 %v1128_v6, %v1120_v57  ;;  %v1218_v19 = vpack.c.bf16 %v1130_v58, %v1122_v59 }
 0x1b7   : > { %v1217_v2 = vpack.c.bf16 %v1129_v61, %v1121_v60  ;;  %v1219_v51 = vpack.c.bf16 %v1131_v16, %v1123_v15  ;;  %v688_v3 = vpop.f32.mrb[20].mxu0  ;;  %v801_v4 = vpop.f32.mrb[20].mxu1  ;;  %2350 = vmatpush3.bf16.msra.mxu0 %v1415_v45  ;;  %2414 = vmatpush3.bf16.msra.mxu1 %v1431_v56 }
 0x1b8   : > { %v689_v5 = vadd.f32 %v688_v3, %v3538_v63  ;;  %v802_v8 = vadd.f32 %v801_v4, %v3541_v22  ;;  %v690_v9 = vpop.f32.mrb[21].mxu0  ;;  %v803_v17 = vpop.f32.mrb[21].mxu1 }
 0x1b9   : > { %v691_v23 = vadd.f32 %v690_v9, %v3544_v0  ;;  %v804_v24 = vadd.f32 %v803_v17, %v3547_v1  ;;  %v692_v54 = vpop.f32.mrb[22].mxu0  ;;  %v805_v55 = vpop.f32.mrb[22].mxu1  ;;  %1511 = vmatprep.mubr.bf16.mxu0 %v1217_v2  ;;  %1608 = vmatprep.mubr.bf16.mxu1 %v1219_v51 }
 0x1ba   : > { %v693_v7 = vadd.f32 %v692_v54, %v3538_v63  ;;  %v806_v25 = vadd.f32 %v805_v55, %v3541_v22  ;;  %v694_v26 = vpop.f32.mrb[23].mxu0  ;;  %v807_v10 = vpop.f32.mrb[23].mxu1  ;;  %1512 = vmatmul.mubr.bf16.gmra.mrb[80].mxu0 %v1216_v62  ;;  %1609 = vmatmul.mubr.bf16.gmra.mrb[80].mxu1 %v1218_v19  ;;  %v1136_v14 = vmax.f32 %v689_v5, 0.0  ;;  %v1138_v12 = vmax.f32 %v802_v8, 0.0 }
 0x1bb   : > { %v695_v27 = vadd.f32 %v694_v26, %v3544_v0  ;;  %v808_v53 = vadd.f32 %v807_v10, %v3547_v1  ;;  %v1137_v33 = vmax.f32 %v691_v23, 0.0  ;;  %v1139_v34 = vmax.f32 %v804_v24, 0.0 }
 0x1bc   : > { %v1144_v28 = vmax.f32 %v693_v7, 0.0  ;;  %v1146_v29 = vmax.f32 %v806_v25, 0.0  ;;  %v508_v19 = vsub.s32 6, %v3526_v18  ;;  %v504_v5 = vsub.s32 5, %v3526_v18 }
 0x1bd   : > { %v1145_v35 = vmax.f32 %v695_v27, 0.0  ;;  %v1147_v36 = vmax.f32 %v808_v53, 0.0  ;;  %v512_v8 = vsub.s32 7, %v3526_v18  ;;  %v3920_v26 = vrot.slane %v3533_v21, %v500_v52 }
 0x1be   : > { %v1224_v37 = vpack.c.bf16 %v1144_v28, %v1136_v14  ;;  %v1226_v20 = vpack.c.bf16 %v1146_v29, %v1138_v12  ;;  %v3925_v14 = vrot.slane %v3533_v21, %v508_v19  ;;  %v3930_v29 = vrot.slane %v3533_v21, %v504_v5 }
 0x1bf   : > { %v1225_v38 = vpack.c.bf16 %v1145_v35, %v1137_v33  ;;  %v1227_v39 = vpack.c.bf16 %v1147_v36, %v1139_v34  ;;  %v698_v40 = vpop.f32.mrb[24].mxu0  ;;  %v811_v41 = vpop.f32.mrb[24].mxu1  ;;  %v3933_v33 = vrot.slane %v3533_v21, %v512_v8 }
 0x1c0   : > { %v699_v42 = vadd.f32 %v698_v40, %v3538_v63  ;;  %v812_v13 = vadd.f32 %v811_v41, %v3541_v22  ;;  %v700_v31 = vpop.f32.mrb[25].mxu0  ;;  %v813_v43 = vpop.f32.mrb[25].mxu1 }
 0x1c1   : > { %v701_v44 = vadd.f32 %v700_v31, %v3544_v0  ;;  %v814_v47 = vadd.f32 %v813_v43, %v3547_v1  ;;  %v702_v48 = vpop.f32.mrb[26].mxu0  ;;  %v815_v11 = vpop.f32.mrb[26].mxu1  ;;  %1519 = vmatprep.mubr.bf16.mxu0 %v1225_v38  ;;  %1616 = vmatprep.mubr.bf16.mxu1 %v1227_v39 }
 0x1c2   : > { %v703_v46 = vadd.f32 %v702_v48, %v3538_v63  ;;  %v816_v49 = vadd.f32 %v815_v11, %v3541_v22  ;;  %v704_v30 = vpop.f32.mrb[27].mxu0  ;;  %v817_v32 = vpop.f32.mrb[27].mxu1  ;;  %1520 = vmatmul.mubr.bf16.gmra.mrb[84].mxu0 %v1224_v37  ;;  %1617 = vmatmul.mubr.bf16.gmra.mrb[84].mxu1 %v1226_v20  ;;  %v1152_v56 = vmax.f32 %v699_v42, 0.0  ;;  %v1154_v57 = vmax.f32 %v812_v13, 0.0 }
 0x1c3   : > { %v705_v45 = vadd.f32 %v704_v30, %v3544_v0  ;;  %v818_v50 = vadd.f32 %v817_v32, %v3547_v1  ;;  %v1153_v58 = vmax.f32 %v701_v44, 0.0  ;;  %v1155_v60 = vmax.f32 %v814_v47, 0.0 }
 0x1c4   : > { %v1160_v59 = vmax.f32 %v703_v46, 0.0  ;;  %v1162_v6 = vmax.f32 %v816_v49, 0.0 }
 0x1c5   : > { %v1161_v15 = vmax.f32 %v705_v45, 0.0  ;;  %v1163_v61 = vmax.f32 %v818_v50, 0.0 }
 0x1c6   : > { %v1232_v16 = vpack.c.bf16 %v1160_v59, %v1152_v56  ;;  %v1234_v62 = vpack.c.bf16 %v1162_v6, %v1154_v57 }
 0x1c7   : > { %v1233_v2 = vpack.c.bf16 %v1161_v15, %v1153_v58  ;;  %v1235_v51 = vpack.c.bf16 %v1163_v61, %v1155_v60  ;;  %v708_v3 = vpop.f32.mrb[28].mxu0  ;;  %v821_v4 = vpop.f32.mrb[28].mxu1 }
 0x1c8   : > { %v709_v9 = vadd.f32 %v708_v3, %v3538_v63  ;;  %v822_v17 = vadd.f32 %v821_v4, %v3541_v22  ;;  %v710_v23 = vpop.f32.mrb[29].mxu0  ;;  %v823_v24 = vpop.f32.mrb[29].mxu1 }
 0x1c9   : > { %v711_v54 = vadd.f32 %v710_v23, %v3544_v0  ;;  %v824_v55 = vadd.f32 %v823_v24, %v3547_v1  ;;  %v712_v7 = vpop.f32.mrb[30].mxu0  ;;  %v825_v25 = vpop.f32.mrb[30].mxu1  ;;  %1527 = vmatprep.mubr.bf16.mxu0 %v1233_v2  ;;  %1624 = vmatprep.mubr.bf16.mxu1 %v1235_v51 }
 0x1ca   : > { %v713_v10 = vadd.f32 %v712_v7, %v3538_v63  ;;  %v826_v18 = vadd.f32 %v825_v25, %v3541_v22  ;;  %v714_v27 = vpop.f32.mrb[31].mxu0  ;;  %v827_v53 = vpop.f32.mrb[31].mxu1  ;;  %1528 = vmatmul.mubr.bf16.gmra.mrb[88].mxu0 %v1232_v16  ;;  %1625 = vmatmul.mubr.bf16.gmra.mrb[88].mxu1 %v1234_v62  ;;  %v1168_v63 = vmax.f32 %v709_v9, 0.0  ;;  %v1170_v34 = vmax.f32 %v822_v17, 0.0 }
 0x1cb   : > { %v715_v12 = vadd.f32 %v714_v27, %v3544_v0  ;;  %v828_v28 = vadd.f32 %v827_v53, %v3547_v1  ;;  %v1169_v36 = vmax.f32 %v711_v54, 0.0  ;;  %v1171_v37 = vmax.f32 %v824_v55, 0.0 }
 0x1cc   : > { %v1176_v22 = vmax.f32 %v713_v10, 0.0  ;;  %v1178_v35 = vmax.f32 %v826_v18, 0.0 }
 0x1cd   : > { %v1177_v20 = vmax.f32 %v715_v12, 0.0  ;;  %v1179_v38 = vmax.f32 %v828_v28, 0.0 }
 0x1ce   : > { %v1240_v39 = vpack.c.bf16 %v1176_v22, %v1168_v63  ;;  %v1242_v40 = vpack.c.bf16 %v1178_v35, %v1170_v34 }
 0x1cf   : > { %v1241_v41 = vpack.c.bf16 %v1177_v20, %v1169_v36  ;;  %v1243_v0 = vpack.c.bf16 %v1179_v38, %v1171_v37  ;;  %v864_v42 = vpop.f32.mrb[32].mxu0  ;;  %v977_v1 = vpop.f32.mrb[32].mxu1 }
 0x1d0   : > { %v865_v13 = vadd.f32 %v864_v42, %v3920_v26  ;;  %v978_v31 = vadd.f32 %v977_v1, %v3925_v14  ;;  %v866_v21 = vpop.f32.mrb[33].mxu0  ;;  %v979_v43 = vpop.f32.mrb[33].mxu1 }
 0x1d1   : > { %v867_v44 = vadd.f32 %v866_v21, %v3930_v29  ;;  %v980_v47 = vadd.f32 %v979_v43, %v3933_v33  ;;  %v868_v48 = vpop.f32.mrb[34].mxu0  ;;  %v981_v11 = vpop.f32.mrb[34].mxu1  ;;  %1535 = vmatprep.mubr.bf16.mxu0 %v1241_v41  ;;  %1632 = vmatprep.mubr.bf16.mxu1 %v1243_v0 }
 0x1d2   : > { %v869_v46 = vadd.f32 %v868_v48, %v3920_v26  ;;  %v982_v49 = vadd.f32 %v981_v11, %v3925_v14  ;;  %v870_v30 = vpop.f32.mrb[35].mxu0  ;;  %v983_v32 = vpop.f32.mrb[35].mxu1  ;;  %1536 = vmatmul.mubr.bf16.gmra.mrb[92].mxu0 %v1240_v39  ;;  %1633 = vmatmul.mubr.bf16.gmra.mrb[92].mxu1 %v1242_v40  ;;  %v1060_v52 = vmax.f32 %v865_v13, 0.0  ;;  %v1062_v56 = vmax.f32 %v978_v31, 0.0 }
 0x1d3   : > { %v871_v45 = vadd.f32 %v870_v30, %v3930_v29  ;;  %v984_v50 = vadd.f32 %v983_v32, %v3933_v33  ;;  %v1061_v6 = vmax.f32 %v867_v44, 0.0  ;;  %v1063_v58 = vmax.f32 %v980_v47, 0.0 }
 0x1d4   : > { %v1068_v57 = vmax.f32 %v869_v46, 0.0  ;;  %v1070_v59 = vmax.f32 %v982_v49, 0.0 }
 0x1d5   : > { %v1069_v60 = vmax.f32 %v871_v45, 0.0  ;;  %v1071_v15 = vmax.f32 %v984_v50, 0.0 }
 0x1d6   : > { %v1188_v61 = vpack.c.bf16 %v1068_v57, %v1060_v52  ;;  %v1190_v16 = vpack.c.bf16 %v1070_v59, %v1062_v56 }
 0x1d7   : > { %v1189_v62 = vpack.c.bf16 %v1069_v60, %v1061_v6  ;;  %v1191_v19 = vpack.c.bf16 %v1071_v15, %v1063_v58  ;;  %v874_v2 = vpop.f32.mrb[36].mxu0  ;;  %v987_v51 = vpop.f32.mrb[36].mxu1 }
 0x1d8   : > { %v875_v3 = vadd.f32 %v874_v2, %v3920_v26  ;;  %v988_v4 = vadd.f32 %v987_v51, %v3925_v14  ;;  %v876_v5 = vpop.f32.mrb[37].mxu0  ;;  %v989_v8 = vpop.f32.mrb[37].mxu1 }
 0x1d9   : > { %v877_v9 = vadd.f32 %v876_v5, %v3930_v29  ;;  %v990_v17 = vadd.f32 %v989_v8, %v3933_v33  ;;  %v878_v23 = vpop.f32.mrb[38].mxu0  ;;  %v991_v24 = vpop.f32.mrb[38].mxu1  ;;  %1673 = vmatprep.mubr.bf16.mxu0 %v1189_v62  ;;  %1770 = vmatprep.mubr.bf16.mxu1 %v1191_v19 }
 0x1da   : > { %v879_v54 = vadd.f32 %v878_v23, %v3920_v26  ;;  %v992_v55 = vadd.f32 %v991_v24, %v3925_v14  ;;  %v880_v7 = vpop.f32.mrb[39].mxu0  ;;  %v993_v25 = vpop.f32.mrb[39].mxu1  ;;  %1674 = vmatmul.mubr.bf16.vlgmr.msra.gmra.mrb[96].mxu0 %v1188_v61  ;;  %1771 = vmatmul.mubr.bf16.vlgmr.msra.gmra.mrb[96].mxu1 %v1190_v16  ;;  %v1076_v27 = vmax.f32 %v875_v3, 0.0  ;;  %v1078_v53 = vmax.f32 %v988_v4, 0.0 }
 0x1db   : > { %v881_v10 = vadd.f32 %v880_v7, %v3930_v29  ;;  %v994_v18 = vadd.f32 %v993_v25, %v3933_v33  ;;  %v1077_v63 = vmax.f32 %v877_v9, 0.0  ;;  %v1079_v34 = vmax.f32 %v990_v17, 0.0 }
 0x1dc   : > { %v1084_v12 = vmax.f32 %v879_v54, 0.0  ;;  %v1086_v28 = vmax.f32 %v992_v55, 0.0 }
 0x1dd   : > { %v1085_v22 = vmax.f32 %v881_v10, 0.0  ;;  %v1087_v35 = vmax.f32 %v994_v18, 0.0 }
 0x1de   : > { %v1196_v36 = vpack.c.bf16 %v1084_v12, %v1076_v27  ;;  %v1198_v37 = vpack.c.bf16 %v1086_v28, %v1078_v53 }
 0x1df   : > { %v1197_v20 = vpack.c.bf16 %v1085_v22, %v1077_v63  ;;  %v1199_v38 = vpack.c.bf16 %v1087_v35, %v1079_v34  ;;  %v884_v39 = vpop.f32.mrb[40].mxu0  ;;  %v997_v40 = vpop.f32.mrb[40].mxu1 }
 0x1e0   : > { %v885_v41 = vadd.f32 %v884_v39, %v3920_v26  ;;  %v998_v0 = vadd.f32 %v997_v40, %v3925_v14  ;;  %v886_v42 = vpop.f32.mrb[41].mxu0  ;;  %v999_v1 = vpop.f32.mrb[41].mxu1 }
 0x1e1   : > { %v887_v13 = vadd.f32 %v886_v42, %v3930_v29  ;;  %v1000_v31 = vadd.f32 %v999_v1, %v3933_v33  ;;  %v888_v21 = vpop.f32.mrb[42].mxu0  ;;  %v1001_v43 = vpop.f32.mrb[42].mxu1  ;;  %1681 = vmatprep.mubr.bf16.mxu0 %v1197_v20  ;;  %1778 = vmatprep.mubr.bf16.mxu1 %v1199_v38 }
 0x1e2   : > { %v889_v44 = vadd.f32 %v888_v21, %v3920_v26  ;;  %v1002_v47 = vadd.f32 %v1001_v43, %v3925_v14  ;;  %v890_v48 = vpop.f32.mrb[43].mxu0  ;;  %v1003_v11 = vpop.f32.mrb[43].mxu1  ;;  %1682 = vmatmul.mubr.bf16.gmra.mrb[100].mxu0 %v1196_v36  ;;  %1779 = vmatmul.mubr.bf16.gmra.mrb[100].mxu1 %v1198_v37  ;;  %v1092_v30 = vmax.f32 %v885_v41, 0.0  ;;  %v1094_v32 = vmax.f32 %v998_v0, 0.0 }
 0x1e3   : > { %v891_v46 = vadd.f32 %v890_v48, %v3930_v29  ;;  %v1004_v49 = vadd.f32 %v1003_v11, %v3933_v33  ;;  %v1093_v52 = vmax.f32 %v887_v13, 0.0  ;;  %v1095_v56 = vmax.f32 %v1000_v31, 0.0 }
 0x1e4   : > { %v1100_v45 = vmax.f32 %v889_v44, 0.0  ;;  %v1102_v50 = vmax.f32 %v1002_v47, 0.0 }
 0x1e5   : > { %v1101_v57 = vmax.f32 %v891_v46, 0.0  ;;  %v1103_v59 = vmax.f32 %v1004_v49, 0.0 }
 0x1e6   : > { %v1204_v6 = vpack.c.bf16 %v1100_v45, %v1092_v30  ;;  %v1206_v58 = vpack.c.bf16 %v1102_v50, %v1094_v32 }
 0x1e7   : > { %v1205_v60 = vpack.c.bf16 %v1101_v57, %v1093_v52  ;;  %v1207_v15 = vpack.c.bf16 %v1103_v59, %v1095_v56  ;;  %v894_v61 = vpop.f32.mrb[44].mxu0  ;;  %v1007_v16 = vpop.f32.mrb[44].mxu1 }
 0x1e8   : > { %v895_v62 = vadd.f32 %v894_v61, %v3920_v26  ;;  %v1008_v19 = vadd.f32 %v1007_v16, %v3925_v14  ;;  %v896_v2 = vpop.f32.mrb[45].mxu0  ;;  %v1009_v51 = vpop.f32.mrb[45].mxu1 }
 0x1e9   : > { %v897_v3 = vadd.f32 %v896_v2, %v3930_v29  ;;  %v1010_v4 = vadd.f32 %v1009_v51, %v3933_v33  ;;  %v898_v5 = vpop.f32.mrb[46].mxu0  ;;  %v1011_v8 = vpop.f32.mrb[46].mxu1  ;;  %1689 = vmatprep.mubr.bf16.mxu0 %v1205_v60  ;;  %1786 = vmatprep.mubr.bf16.mxu1 %v1207_v15 }
 0x1ea   : > { %v899_v9 = vadd.f32 %v898_v5, %v3920_v26  ;;  %v1012_v17 = vadd.f32 %v1011_v8, %v3925_v14  ;;  %v900_v23 = vpop.f32.mrb[47].mxu0  ;;  %v1013_v24 = vpop.f32.mrb[47].mxu1  ;;  %1690 = vmatmul.mubr.bf16.gmra.mrb[104].mxu0 %v1204_v6  ;;  %1787 = vmatmul.mubr.bf16.gmra.mrb[104].mxu1 %v1206_v58  ;;  %v1108_v7 = vmax.f32 %v895_v62, 0.0  ;;  %v1110_v25 = vmax.f32 %v1008_v19, 0.0 }
 0x1eb   : > { %v901_v54 = vadd.f32 %v900_v23, %v3930_v29  ;;  %v1014_v55 = vadd.f32 %v1013_v24, %v3933_v33  ;;  %v1109_v27 = vmax.f32 %v897_v3, 0.0  ;;  %v1111_v53 = vmax.f32 %v1010_v4, 0.0 }
 0x1ec   : > { %v1116_v10 = vmax.f32 %v899_v9, 0.0  ;;  %v1118_v18 = vmax.f32 %v1012_v17, 0.0 }
 0x1ed   : > { %v1117_v12 = vmax.f32 %v901_v54, 0.0  ;;  %v1119_v28 = vmax.f32 %v1014_v55, 0.0 }
 0x1ee   : > { %v1212_v63 = vpack.c.bf16 %v1116_v10, %v1108_v7  ;;  %v1214_v34 = vpack.c.bf16 %v1118_v18, %v1110_v25 }
 0x1ef   : > { %v1213_v22 = vpack.c.bf16 %v1117_v12, %v1109_v27  ;;  %v1215_v35 = vpack.c.bf16 %v1119_v28, %v1111_v53  ;;  %v904_v36 = vpop.f32.mrb[48].mxu0  ;;  %v1017_v37 = vpop.f32.mrb[48].mxu1 }
 0x1f0   : > { %v905_v20 = vadd.f32 %v904_v36, %v3920_v26  ;;  %v1018_v38 = vadd.f32 %v1017_v37, %v3925_v14  ;;  %v906_v39 = vpop.f32.mrb[49].mxu0  ;;  %v1019_v40 = vpop.f32.mrb[49].mxu1 }
 0x1f1   : > { %v907_v41 = vadd.f32 %v906_v39, %v3930_v29  ;;  %v1020_v0 = vadd.f32 %v1019_v40, %v3933_v33  ;;  %v908_v42 = vpop.f32.mrb[50].mxu0  ;;  %v1021_v1 = vpop.f32.mrb[50].mxu1  ;;  %1697 = vmatprep.mubr.bf16.mxu0 %v1213_v22  ;;  %1794 = vmatprep.mubr.bf16.mxu1 %v1215_v35 }
 0x1f2   : > { %v909_v13 = vadd.f32 %v908_v42, %v3920_v26  ;;  %v1022_v31 = vadd.f32 %v1021_v1, %v3925_v14  ;;  %v910_v21 = vpop.f32.mrb[51].mxu0  ;;  %v1023_v43 = vpop.f32.mrb[51].mxu1  ;;  %1698 = vmatmul.mubr.bf16.gmra.mrb[108].mxu0 %v1212_v63  ;;  %1795 = vmatmul.mubr.bf16.gmra.mrb[108].mxu1 %v1214_v34  ;;  %v1124_v48 = vmax.f32 %v905_v20, 0.0  ;;  %v1126_v11 = vmax.f32 %v1018_v38, 0.0 }
 0x1f3   : > { %v911_v44 = vadd.f32 %v910_v21, %v3930_v29  ;;  %v1024_v47 = vadd.f32 %v1023_v43, %v3933_v33  ;;  %v1125_v30 = vmax.f32 %v907_v41, 0.0  ;;  %v1127_v32 = vmax.f32 %v1020_v0, 0.0 }
 0x1f4   : > { %v1132_v46 = vmax.f32 %v909_v13, 0.0  ;;  %v1134_v49 = vmax.f32 %v1022_v31, 0.0 }
 0x1f5   : > { %v1133_v45 = vmax.f32 %v911_v44, 0.0  ;;  %v1135_v50 = vmax.f32 %v1024_v47, 0.0 }
 0x1f6   : > { %v1220_v52 = vpack.c.bf16 %v1132_v46, %v1124_v48  ;;  %v1222_v56 = vpack.c.bf16 %v1134_v49, %v1126_v11 }
 0x1f7   : > { %v1221_v57 = vpack.c.bf16 %v1133_v45, %v1125_v30  ;;  %v1223_v59 = vpack.c.bf16 %v1135_v50, %v1127_v32  ;;  %v914_v6 = vpop.f32.mrb[52].mxu0  ;;  %v1027_v58 = vpop.f32.mrb[52].mxu1 }
 0x1f8   : > { %v915_v60 = vadd.f32 %v914_v6, %v3920_v26  ;;  %v1028_v15 = vadd.f32 %v1027_v58, %v3925_v14  ;;  %v916_v61 = vpop.f32.mrb[53].mxu0  ;;  %v1029_v16 = vpop.f32.mrb[53].mxu1 }
 0x1f9   : > { %v917_v62 = vadd.f32 %v916_v61, %v3930_v29  ;;  %v1030_v19 = vadd.f32 %v1029_v16, %v3933_v33  ;;  %v918_v2 = vpop.f32.mrb[54].mxu0  ;;  %v1031_v51 = vpop.f32.mrb[54].mxu1  ;;  %1705 = vmatprep.mubr.bf16.mxu0 %v1221_v57  ;;  %1802 = vmatprep.mubr.bf16.mxu1 %v1223_v59 }
 0x1fa   : > { %v919_v3 = vadd.f32 %v918_v2, %v3920_v26  ;;  %v1032_v4 = vadd.f32 %v1031_v51, %v3925_v14  ;;  %v920_v5 = vpop.f32.mrb[55].mxu0  ;;  %v1033_v8 = vpop.f32.mrb[55].mxu1  ;;  %1706 = vmatmul.mubr.bf16.gmra.mrb[112].mxu0 %v1220_v52  ;;  %1803 = vmatmul.mubr.bf16.gmra.mrb[112].mxu1 %v1222_v56  ;;  %v1140_v23 = vmax.f32 %v915_v60, 0.0  ;;  %v1142_v24 = vmax.f32 %v1028_v15, 0.0 }
 0x1fb   : > { %v921_v9 = vadd.f32 %v920_v5, %v3930_v29  ;;  %v1034_v17 = vadd.f32 %v1033_v8, %v3933_v33  ;;  %v1141_v7 = vmax.f32 %v917_v62, 0.0  ;;  %v1143_v25 = vmax.f32 %v1030_v19, 0.0 }
 0x1fc   : > { %v1148_v54 = vmax.f32 %v919_v3, 0.0  ;;  %v1150_v55 = vmax.f32 %v1032_v4, 0.0 }
 0x1fd   : > { %v1149_v10 = vmax.f32 %v921_v9, 0.0  ;;  %v1151_v18 = vmax.f32 %v1034_v17, 0.0 }
 0x1fe   : > { %v1228_v27 = vpack.c.bf16 %v1148_v54, %v1140_v23  ;;  %v1230_v53 = vpack.c.bf16 %v1150_v55, %v1142_v24 }
 0x1ff   : > { %v1229_v12 = vpack.c.bf16 %v1149_v10, %v1141_v7  ;;  %v1231_v28 = vpack.c.bf16 %v1151_v18, %v1143_v25  ;;  %v924_v63 = vpop.f32.mrb[56].mxu0  ;;  %v1037_v34 = vpop.f32.mrb[56].mxu1 }
 0x200   : > { %v925_v22 = vadd.f32 %v924_v63, %v3920_v26  ;;  %v1038_v35 = vadd.f32 %v1037_v34, %v3925_v14  ;;  %v926_v36 = vpop.f32.mrb[57].mxu0  ;;  %v1039_v37 = vpop.f32.mrb[57].mxu1 }
 0x201   : > { %v927_v20 = vadd.f32 %v926_v36, %v3930_v29  ;;  %v1040_v38 = vadd.f32 %v1039_v37, %v3933_v33  ;;  %v928_v39 = vpop.f32.mrb[58].mxu0  ;;  %v1041_v40 = vpop.f32.mrb[58].mxu1  ;;  %1713 = vmatprep.mubr.bf16.mxu0 %v1229_v12  ;;  %1810 = vmatprep.mubr.bf16.mxu1 %v1231_v28 }
 0x202   : > { %v929_v41 = vadd.f32 %v928_v39, %v3920_v26  ;;  %v1042_v0 = vadd.f32 %v1041_v40, %v3925_v14  ;;  %v930_v42 = vpop.f32.mrb[59].mxu0  ;;  %v1043_v1 = vpop.f32.mrb[59].mxu1  ;;  %1714 = vmatmul.mubr.bf16.gmra.mrb[116].mxu0 %v1228_v27  ;;  %1811 = vmatmul.mubr.bf16.gmra.mrb[116].mxu1 %v1230_v53  ;;  %v1156_v21 = vmax.f32 %v925_v22, 0.0  ;;  %v1158_v43 = vmax.f32 %v1038_v35, 0.0 }
 0x203   : > { %v931_v13 = vadd.f32 %v930_v42, %v3930_v29  ;;  %v1044_v31 = vadd.f32 %v1043_v1, %v3933_v33  ;;  %v1157_v48 = vmax.f32 %v927_v20, 0.0  ;;  %v1159_v11 = vmax.f32 %v1040_v38, 0.0 }
 0x204   : > { %v1164_v44 = vmax.f32 %v929_v41, 0.0  ;;  %v1166_v47 = vmax.f32 %v1042_v0, 0.0 }
 0x205   : > { %v1165_v46 = vmax.f32 %v931_v13, 0.0  ;;  %v1167_v49 = vmax.f32 %v1044_v31, 0.0 }
 0x206   : > { %v1236_v30 = vpack.c.bf16 %v1164_v44, %v1156_v21  ;;  %v1238_v32 = vpack.c.bf16 %v1166_v47, %v1158_v43 }
 0x207   : > { %v1237_v45 = vpack.c.bf16 %v1165_v46, %v1157_v48  ;;  %v1239_v50 = vpack.c.bf16 %v1167_v49, %v1159_v11  ;;  %v934_v52 = vpop.f32.mrb[60].mxu0  ;;  %v1047_v56 = vpop.f32.mrb[60].mxu1 }
 0x208   : > { %v935_v57 = vadd.f32 %v934_v52, %v3920_v26  ;;  %v1048_v59 = vadd.f32 %v1047_v56, %v3925_v14  ;;  %v936_v6 = vpop.f32.mrb[61].mxu0  ;;  %v1049_v58 = vpop.f32.mrb[61].mxu1 }
 0x209   : > { %v937_v60 = vadd.f32 %v936_v6, %v3930_v29  ;;  %v1050_v15 = vadd.f32 %v1049_v58, %v3933_v33  ;;  %v938_v61 = vpop.f32.mrb[62].mxu0  ;;  %v1051_v16 = vpop.f32.mrb[62].mxu1  ;;  %1721 = vmatprep.mubr.bf16.mxu0 %v1237_v45  ;;  %1818 = vmatprep.mubr.bf16.mxu1 %v1239_v50 }
 0x20a   : > { %v939_v62 = vadd.f32 %v938_v61, %v3920_v26  ;;  %v1052_v19 = vadd.f32 %v1051_v16, %v3925_v14  ;;  %v940_v2 = vpop.f32.mrb[63].mxu0  ;;  %v1053_v51 = vpop.f32.mrb[63].mxu1  ;;  %1722 = vmatmul.mubr.bf16.gmra.mrb[120].mxu0 %v1236_v30  ;;  %1819 = vmatmul.mubr.bf16.gmra.mrb[120].mxu1 %v1238_v32  ;;  %v1172_v5 = vmax.f32 %v935_v57, 0.0  ;;  %v1174_v8 = vmax.f32 %v1048_v59, 0.0 }
 0x20b   : > { %v941_v3 = vadd.f32 %v940_v2, %v3930_v29  ;;  %v1054_v4 = vadd.f32 %v1053_v51, %v3933_v33  ;;  %v1173_v23 = vmax.f32 %v937_v60, 0.0  ;;  %v1175_v24 = vmax.f32 %v1050_v15, 0.0  ;;  %v4002_v33 = vld [vmem:[%s4316_s4] ss:$0 sm:$0xff] }
 0x20c   : > { %v1180_v9 = vmax.f32 %v939_v62, 0.0  ;;  %v1182_v17 = vmax.f32 %v1052_v19, 0.0 }
 0x20d   : > { %v1181_v54 = vmax.f32 %v941_v3, 0.0  ;;  %v1183_v55 = vmax.f32 %v1054_v4, 0.0 }
 0x20e   : > { %v1244_v7 = vpack.c.bf16 %v1180_v9, %v1172_v5  ;;  %v1246_v26 = vpack.c.bf16 %v1182_v17, %v1174_v8 }
 0x20f   : > { %v1245_v25 = vpack.c.bf16 %v1181_v54, %v1173_v23  ;;  %v1247_v14 = vpack.c.bf16 %v1183_v55, %v1175_v24 }
 0x211   : > { %1729 = vmatprep.mubr.bf16.mxu0 %v1245_v25  ;;  %1826 = vmatprep.mubr.bf16.mxu1 %v1247_v14 }
 0x212   : > { %1730 = vmatmul.mubr.bf16.gmra.mrb[124].mxu0 %v1244_v7  ;;  %1827 = vmatmul.mubr.bf16.gmra.mrb[124].mxu1 %v1246_v26 }
 0x26d   : > { %v2223_v10 = vpop.f32.mrb[64].mxu0  ;;  %v2287_v29 = vpop.f32.mrb[64].mxu1 }
 0x26e   : > { %v2224_v18 = vpop.f32.mrb[65].mxu0  ;;  %v2288_v27 = vpop.f32.mrb[65].mxu1 }
 0x26f   : > { %v2225_v53 = vadd.f32 %v2224_v18, %v2223_v10  ;;  %v2289_v12 = vadd.f32 %v2288_v27, %v2287_v29  ;;  %v2226_v28 = vpop.f32.mrb[66].mxu0  ;;  %v2290_v63 = vpop.f32.mrb[66].mxu1 }
 0x270   : > { %v2227_v34 = vpop.f32.mrb[67].mxu0  ;;  %v2291_v22 = vpop.f32.mrb[67].mxu1 }
 0x271   : > { %v1482_v35 = vadd.f32 %v2225_v53, %v4002_v33  ;;  %v2228_v36 = vadd.f32 %v2227_v34, %v2226_v28  ;;  %v2292_v37 = vadd.f32 %v2291_v22, %v2290_v63 }
 0x273   : > { %v4005_v20 = vadd.f32 %v2289_v12, %v1482_v35  ;;  %v1485_v38 = vadd.f32 %v2228_v36, %v4002_v33 }
 0x275   : > { %v4008_v39 = vadd.f32 %v2292_v37, %v1485_v38  ;;  %v2229_v40 = vpop.f32.mrb[68].mxu0  ;;  %v2293_v41 = vpop.f32.mrb[68].mxu1 }
 0x276   : > { %v2230_v0 = vpop.f32.mrb[69].mxu0  ;;  %v2294_v42 = vpop.f32.mrb[69].mxu1 }
 0x277   : > { %v2231_v1 = vadd.f32 %v2230_v0, %v2229_v40  ;;  %v2295_v13 = vadd.f32 %v2294_v42, %v2293_v41  ;;  %v2232_v31 = vpop.f32.mrb[70].mxu0  ;;  %v2296_v21 = vpop.f32.mrb[70].mxu1 }
 0x278   : > { %v2233_v43 = vpop.f32.mrb[71].mxu0  ;;  %v2297_v44 = vpop.f32.mrb[71].mxu1 }
 0x279   : > { %v1490_v47 = vadd.f32 %v2231_v1, %v4002_v33  ;;  %v2234_v48 = vadd.f32 %v2233_v43, %v2232_v31  ;;  %v2298_v11 = vadd.f32 %v2297_v44, %v2296_v21 }
 0x27b   : > { %v4011_v46 = vadd.f32 %v2295_v13, %v1490_v47  ;;  %v1493_v49 = vadd.f32 %v2234_v48, %v4002_v33 }
 0x27d   : > { %v4014_v30 = vadd.f32 %v2298_v11, %v1493_v49  ;;  %v2235_v32 = vpop.f32.mrb[72].mxu0  ;;  %v2299_v45 = vpop.f32.mrb[72].mxu1 }
 0x27e   : > { %v2236_v50 = vpop.f32.mrb[73].mxu0  ;;  %v2300_v52 = vpop.f32.mrb[73].mxu1 }
 0x27f   : > { %v2237_v56 = vadd.f32 %v2236_v50, %v2235_v32  ;;  %v2301_v57 = vadd.f32 %v2300_v52, %v2299_v45  ;;  %v2238_v59 = vpop.f32.mrb[74].mxu0  ;;  %v2302_v6 = vpop.f32.mrb[74].mxu1 }
 0x280   : > { %v2239_v58 = vpop.f32.mrb[75].mxu0  ;;  %v2303_v60 = vpop.f32.mrb[75].mxu1 }
 0x281   : > { %v1498_v15 = vadd.f32 %v2237_v56, %v4002_v33  ;;  %v2240_v61 = vadd.f32 %v2239_v58, %v2238_v59  ;;  %v2304_v16 = vadd.f32 %v2303_v60, %v2302_v6 }
 0x283   : > { %v4017_v62 = vadd.f32 %v2301_v57, %v1498_v15  ;;  %v1501_v19 = vadd.f32 %v2240_v61, %v4002_v33 }
 0x285   : > { %v4020_v2 = vadd.f32 %v2304_v16, %v1501_v19  ;;  %v2241_v51 = vpop.f32.mrb[76].mxu0  ;;  %v2305_v3 = vpop.f32.mrb[76].mxu1 }
 0x286   : > { %v2242_v4 = vpop.f32.mrb[77].mxu0  ;;  %v2306_v5 = vpop.f32.mrb[77].mxu1 }
 0x287   : > { %v2243_v8 = vadd.f32 %v2242_v4, %v2241_v51  ;;  %v2307_v9 = vadd.f32 %v2306_v5, %v2305_v3  ;;  %v2244_v17 = vpop.f32.mrb[78].mxu0  ;;  %v2308_v23 = vpop.f32.mrb[78].mxu1 }
 0x288   : > { %v2245_v24 = vpop.f32.mrb[79].mxu0  ;;  %v2309_v54 = vpop.f32.mrb[79].mxu1 }
 0x289   : > { %v1506_v55 = vadd.f32 %v2243_v8, %v4002_v33  ;;  %v2246_v7 = vadd.f32 %v2245_v24, %v2244_v17  ;;  %v2310_v26 = vadd.f32 %v2309_v54, %v2308_v23 }
 0x28b   : > { %v4023_v25 = vadd.f32 %v2307_v9, %v1506_v55  ;;  %v1509_v14 = vadd.f32 %v2246_v7, %v4002_v33 }
 0x28d   : > { %v4026_v10 = vadd.f32 %v2310_v26, %v1509_v14  ;;  %v2247_v29 = vpop.f32.mrb[80].mxu0  ;;  %v2311_v18 = vpop.f32.mrb[80].mxu1 }
 0x28e   : > { %v2248_v27 = vpop.f32.mrb[81].mxu0  ;;  %v2312_v53 = vpop.f32.mrb[81].mxu1 }
 0x28f   : > { %v2249_v12 = vadd.f32 %v2248_v27, %v2247_v29  ;;  %v2313_v28 = vadd.f32 %v2312_v53, %v2311_v18  ;;  %v2250_v63 = vpop.f32.mrb[82].mxu0  ;;  %v2314_v34 = vpop.f32.mrb[82].mxu1 }
 0x290   : > { %v2251_v22 = vpop.f32.mrb[83].mxu0  ;;  %v2315_v35 = vpop.f32.mrb[83].mxu1 }
 0x291   : > { %v1514_v36 = vadd.f32 %v2249_v12, %v4002_v33  ;;  %v2252_v37 = vadd.f32 %v2251_v22, %v2250_v63  ;;  %v2316_v38 = vadd.f32 %v2315_v35, %v2314_v34 }
 0x293   : > { %v4029_v40 = vadd.f32 %v2313_v28, %v1514_v36  ;;  %v1517_v41 = vadd.f32 %v2252_v37, %v4002_v33 }
 0x295   : > { %v4032_v0 = vadd.f32 %v2316_v38, %v1517_v41  ;;  %v2253_v42 = vpop.f32.mrb[84].mxu0  ;;  %v2317_v1 = vpop.f32.mrb[84].mxu1 }
 0x296   : > { %v2254_v13 = vpop.f32.mrb[85].mxu0  ;;  %v2318_v31 = vpop.f32.mrb[85].mxu1 }
 0x297   : > { %v2255_v21 = vadd.f32 %v2254_v13, %v2253_v42  ;;  %v2319_v43 = vadd.f32 %v2318_v31, %v2317_v1  ;;  %v2256_v44 = vpop.f32.mrb[86].mxu0  ;;  %v2320_v47 = vpop.f32.mrb[86].mxu1 }
 0x298   : > { %v2257_v48 = vpop.f32.mrb[87].mxu0  ;;  %v2321_v11 = vpop.f32.mrb[87].mxu1 }
 0x299   : > { %v1522_v49 = vadd.f32 %v2255_v21, %v4002_v33  ;;  %v2258_v32 = vadd.f32 %v2257_v48, %v2256_v44  ;;  %v2322_v45 = vadd.f32 %v2321_v11, %v2320_v47 }
 0x29b   : > { %v4035_v50 = vadd.f32 %v2319_v43, %v1522_v49  ;;  %v1525_v52 = vadd.f32 %v2258_v32, %v4002_v33 }
 0x29d   : > { %v4038_v56 = vadd.f32 %v2322_v45, %v1525_v52  ;;  %v2259_v57 = vpop.f32.mrb[88].mxu0  ;;  %v2323_v59 = vpop.f32.mrb[88].mxu1 }
 0x29e   : > { %v2260_v6 = vpop.f32.mrb[89].mxu0  ;;  %v2324_v58 = vpop.f32.mrb[89].mxu1 }
 0x29f   : > { %v2261_v60 = vadd.f32 %v2260_v6, %v2259_v57  ;;  %v2325_v15 = vadd.f32 %v2324_v58, %v2323_v59  ;;  %v2262_v61 = vpop.f32.mrb[90].mxu0  ;;  %v2326_v16 = vpop.f32.mrb[90].mxu1 }
 0x2a0   : > { %v2263_v19 = vpop.f32.mrb[91].mxu0  ;;  %v2327_v51 = vpop.f32.mrb[91].mxu1 }
 0x2a1   : > { %v1530_v3 = vadd.f32 %v2261_v60, %v4002_v33  ;;  %v2264_v4 = vadd.f32 %v2263_v19, %v2262_v61  ;;  %v2328_v5 = vadd.f32 %v2327_v51, %v2326_v16 }
 0x2a3   : > { %v4041_v8 = vadd.f32 %v2325_v15, %v1530_v3  ;;  %v1533_v9 = vadd.f32 %v2264_v4, %v4002_v33 }
 0x2a5   : > { %v4044_v17 = vadd.f32 %v2328_v5, %v1533_v9  ;;  %v2265_v23 = vpop.f32.mrb[92].mxu0  ;;  %v2329_v24 = vpop.f32.mrb[92].mxu1 }
 0x2a6   : > { %v2266_v54 = vpop.f32.mrb[93].mxu0  ;;  %v2330_v55 = vpop.f32.mrb[93].mxu1 }
 0x2a7   : > { %v2267_v7 = vadd.f32 %v2266_v54, %v2265_v23  ;;  %v2331_v26 = vadd.f32 %v2330_v55, %v2329_v24  ;;  %v2268_v14 = vpop.f32.mrb[94].mxu0  ;;  %v2332_v29 = vpop.f32.mrb[94].mxu1 }
 0x2a8   : > { %v2269_v18 = vpop.f32.mrb[95].mxu0  ;;  %v2333_v27 = vpop.f32.mrb[95].mxu1 }
 0x2a9   : > { %v1538_v53 = vadd.f32 %v2267_v7, %v4002_v33  ;;  %v2270_v12 = vadd.f32 %v2269_v18, %v2268_v14  ;;  %v2334_v28 = vadd.f32 %v2333_v27, %v2332_v29 }
 0x2ab   : > { %v4047_v63 = vadd.f32 %v2331_v26, %v1538_v53  ;;  %v1541_v34 = vadd.f32 %v2270_v12, %v4002_v33 }
 0x2ad   : > { %v4050_v22 = vadd.f32 %v2334_v28, %v1541_v34  ;;  %v2351_v35 = vpop.f32.mrb[96].mxu0  ;;  %v2415_v36 = vpop.f32.mrb[96].mxu1 }
 0x2ae   : > { %v2352_v37 = vpop.f32.mrb[97].mxu0  ;;  %v2416_v38 = vpop.f32.mrb[97].mxu1 }
 0x2af   : > { %v2353_v41 = vadd.f32 %v2352_v37, %v2351_v35  ;;  %v2417_v42 = vadd.f32 %v2416_v38, %v2415_v36  ;;  %v2354_v1 = vpop.f32.mrb[98].mxu0  ;;  %v2418_v13 = vpop.f32.mrb[98].mxu1 }
 0x2b0   : > { %v2355_v31 = vpop.f32.mrb[99].mxu0  ;;  %v2419_v21 = vpop.f32.mrb[99].mxu1 }
 0x2b1   : > { %v1676_v43 = vadd.f32 %v2353_v41, %v4005_v20  ;;  %v2356_v44 = vadd.f32 %v2355_v31, %v2354_v1  ;;  %v2420_v47 = vadd.f32 %v2419_v21, %v2418_v13 }
 0x2b3   : > { %v4053_v48 = vadd.f32 %v2417_v42, %v1676_v43  ;;  %v1679_v33 = vadd.f32 %v2356_v44, %v4008_v39 }
 0x2b5   : > { %v4056_v11 = vadd.f32 %v2420_v47, %v1679_v33  ;;  %v2357_v49 = vpop.f32.mrb[100].mxu0  ;;  %v2421_v32 = vpop.f32.mrb[100].mxu1  ;;  %v1836_v45 = vsel %vm1835_vm2, %v4053_v48, -inf }
 0x2b6   : > { %v2358_v52 = vpop.f32.mrb[101].mxu0  ;;  %v2422_v57 = vpop.f32.mrb[101].mxu1  ;;  %1837 = vmax.xlane.f32.xlu1 %v1836_v45 }
 0x2b7   : > { %v2359_v59 = vadd.f32 %v2358_v52, %v2357_v49  ;;  %v2423_v6 = vadd.f32 %v2422_v57, %v2421_v32  ;;  %v2360_v20 = vpop.f32.mrb[102].mxu0  ;;  %v2424_v58 = vpop.f32.mrb[102].mxu1  ;;  %v1839_v19 = vsel %vm1835_vm2, %v4056_v11, -inf }
 0x2b8   : > { %v2361_v60 = vpop.f32.mrb[103].mxu0  ;;  %v2425_v15 = vpop.f32.mrb[103].mxu1 }
 0x2b9   : > { %v1684_v61 = vadd.f32 %v2359_v59, %v4011_v46  ;;  %v2362_v16 = vadd.f32 %v2361_v60, %v2360_v20  ;;  %v2426_v39 = vadd.f32 %v2425_v15, %v2424_v58 }
 0x2ba   : > { %1840 = vmax.xlane.f32.xlu1 %v1839_v19 }
 0x2bb   : > { %v4063_v51 = vadd.f32 %v2423_v6, %v1684_v61  ;;  %v1687_v3 = vadd.f32 %v2362_v16, %v4014_v30 }
 0x2bd   : > { %v4066_v4 = vadd.f32 %v2426_v39, %v1687_v3  ;;  %v2363_v5 = vpop.f32.mrb[104].mxu0  ;;  %v2427_v9 = vpop.f32.mrb[104].mxu1  ;;  %v1842_v23 = vsel %vm1835_vm2, %v4063_v51, -inf }
 0x2be   : > { %v2364_v24 = vpop.f32.mrb[105].mxu0  ;;  %v2428_v54 = vpop.f32.mrb[105].mxu1  ;;  %1843 = vmax.xlane.f32.xlu1 %v1842_v23 }
 0x2bf   : > { %v2365_v46 = vadd.f32 %v2364_v24, %v2363_v5  ;;  %v2429_v55 = vadd.f32 %v2428_v54, %v2427_v9  ;;  %v2366_v7 = vpop.f32.mrb[106].mxu0  ;;  %v2430_v26 = vpop.f32.mrb[106].mxu1  ;;  %v1845_v53 = vsel %vm1835_vm2, %v4066_v4, -inf }
 0x2c0   : > { %v2367_v14 = vpop.f32.mrb[107].mxu0  ;;  %v2431_v29 = vpop.f32.mrb[107].mxu1 }
 0x2c1   : > { %v1692_v18 = vadd.f32 %v2365_v46, %v4017_v62  ;;  %v2368_v27 = vadd.f32 %v2367_v14, %v2366_v7  ;;  %v2432_v30 = vadd.f32 %v2431_v29, %v2430_v26 }
 0x2c2   : > { %1846 = vmax.xlane.f32.xlu1 %v1845_v53 }
 0x2c3   : > { %v4073_v12 = vadd.f32 %v2429_v55, %v1692_v18  ;;  %v1695_v28 = vadd.f32 %v2368_v27, %v4020_v2 }
 0x2c5   : > { %v4076_v34 = vadd.f32 %v2432_v30, %v1695_v28  ;;  %v2369_v35 = vpop.f32.mrb[108].mxu0  ;;  %v2433_v36 = vpop.f32.mrb[108].mxu1  ;;  %v1848_v37 = vsel %vm1835_vm2, %v4073_v12, -inf }
 0x2c6   : > { %v2370_v38 = vpop.f32.mrb[109].mxu0  ;;  %v2434_v41 = vpop.f32.mrb[109].mxu1  ;;  %1849 = vmax.xlane.f32.xlu1 %v1848_v37 }
 0x2c7   : > { %v2371_v62 = vadd.f32 %v2370_v38, %v2369_v35  ;;  %v2435_v42 = vadd.f32 %v2434_v41, %v2433_v36  ;;  %v2372_v1 = vpop.f32.mrb[110].mxu0  ;;  %v2436_v13 = vpop.f32.mrb[110].mxu1  ;;  %v1851_v47 = vsel %vm1835_vm2, %v4076_v34, -inf }
 0x2c8   : > { %v2373_v31 = vpop.f32.mrb[111].mxu0  ;;  %v2437_v21 = vpop.f32.mrb[111].mxu1 }
 0x2c9   : > { %v1700_v43 = vadd.f32 %v2371_v62, %v4023_v25  ;;  %v2374_v44 = vadd.f32 %v2373_v31, %v2372_v1  ;;  %v2438_v2 = vadd.f32 %v2437_v21, %v2436_v13 }
 0x2ca   : > { %1852 = vmax.xlane.f32.xlu1 %v1851_v47 }
 0x2cb   : > { %v4083_v33 = vadd.f32 %v2435_v42, %v1700_v43  ;;  %v1703_v49 = vadd.f32 %v2374_v44, %v4026_v10 }
 0x2cd   : > { %v4086_v32 = vadd.f32 %v2438_v2, %v1703_v49  ;;  %v2375_v45 = vpop.f32.mrb[112].mxu0  ;;  %v2439_v52 = vpop.f32.mrb[112].mxu1  ;;  %v1854_v57 = vsel %vm1835_vm2, %v4083_v33, -inf }
 0x2ce   : > { %v2376_v59 = vpop.f32.mrb[113].mxu0  ;;  %v2440_v6 = vpop.f32.mrb[113].mxu1  ;;  %1855 = vmax.xlane.f32.xlu1 %v1854_v57 }
 0x2cf   : > { %v2377_v25 = vadd.f32 %v2376_v59, %v2375_v45  ;;  %v2441_v20 = vadd.f32 %v2440_v6, %v2439_v52  ;;  %v2378_v58 = vpop.f32.mrb[114].mxu0  ;;  %v2442_v60 = vpop.f32.mrb[114].mxu1  ;;  %v1857_v19 = vsel %vm1835_vm2, %v4086_v32, -inf }
 0x2d0   : > { %v2379_v15 = vpop.f32.mrb[115].mxu0  ;;  %v2443_v61 = vpop.f32.mrb[115].mxu1 }
 0x2d1   : > { %v1708_v16 = vadd.f32 %v2377_v25, %v4029_v40  ;;  %v2380_v39 = vadd.f32 %v2379_v15, %v2378_v58  ;;  %v2444_v10 = vadd.f32 %v2443_v61, %v2442_v60 }
 0x2d2   : > { %1858 = vmax.xlane.f32.xlu1 %v1857_v19 }
 0x2d3   : > { %v4093_v3 = vadd.f32 %v2441_v20, %v1708_v16  ;;  %v1711_v5 = vadd.f32 %v2380_v39, %v4032_v0 }
 0x2d5   : > { %v4096_v9 = vadd.f32 %v2444_v10, %v1711_v5  ;;  %v2381_v23 = vpop.f32.mrb[116].mxu0  ;;  %v2445_v24 = vpop.f32.mrb[116].mxu1  ;;  %v1860_v54 = vsel %vm1835_vm2, %v4093_v3, -inf }
 0x2d6   : > { %v2382_v46 = vpop.f32.mrb[117].mxu0  ;;  %v2446_v55 = vpop.f32.mrb[117].mxu1  ;;  %1861 = vmax.xlane.f32.xlu1 %v1860_v54 }
 0x2d7   : > { %v2383_v40 = vadd.f32 %v2382_v46, %v2381_v23  ;;  %v2447_v7 = vadd.f32 %v2446_v55, %v2445_v24  ;;  %v2384_v26 = vpop.f32.mrb[118].mxu0  ;;  %v2448_v14 = vpop.f32.mrb[118].mxu1  ;;  %v1863_v53 = vsel %vm1835_vm2, %v4096_v9, -inf }
 0x2d8   : > { %v2385_v29 = vpop.f32.mrb[119].mxu0  ;;  %v2449_v18 = vpop.f32.mrb[119].mxu1 }
 0x2d9   : > { %v1716_v27 = vadd.f32 %v2383_v40, %v4035_v50  ;;  %v2386_v30 = vadd.f32 %v2385_v29, %v2384_v26  ;;  %v2450_v0 = vadd.f32 %v2449_v18, %v2448_v14 }
 0x2da   : > { %1864 = vmax.xlane.f32.xlu1 %v1863_v53 }
 0x2db   : > { %v4103_v28 = vadd.f32 %v2447_v7, %v1716_v27  ;;  %v1719_v35 = vadd.f32 %v2386_v30, %v4038_v56 }
 0x2dd   : > { %v4106_v36 = vadd.f32 %v2450_v0, %v1719_v35  ;;  %v2387_v37 = vpop.f32.mrb[120].mxu0  ;;  %v2451_v38 = vpop.f32.mrb[120].mxu1  ;;  %v1866_v41 = vsel %vm1835_vm2, %v4103_v28, -inf }
 0x2de   : > { %v2388_v62 = vpop.f32.mrb[121].mxu0  ;;  %v2452_v42 = vpop.f32.mrb[121].mxu1  ;;  %1867 = vmax.xlane.f32.xlu1 %v1866_v41 }
 0x2df   : > { %v2389_v50 = vadd.f32 %v2388_v62, %v2387_v37  ;;  %v2453_v1 = vadd.f32 %v2452_v42, %v2451_v38  ;;  %v2390_v13 = vpop.f32.mrb[122].mxu0  ;;  %v2454_v31 = vpop.f32.mrb[122].mxu1  ;;  %v1869_v47 = vsel %vm1835_vm2, %v4106_v36, -inf }
 0x2e0   : > { %v2391_v21 = vpop.f32.mrb[123].mxu0  ;;  %v2455_v43 = vpop.f32.mrb[123].mxu1 }
 0x2e1   : > { %v1724_v44 = vadd.f32 %v2389_v50, %v4041_v8  ;;  %v2392_v2 = vadd.f32 %v2391_v21, %v2390_v13  ;;  %v2456_v56 = vadd.f32 %v2455_v43, %v2454_v31 }
 0x2e2   : > { %1870 = vmax.xlane.f32.xlu1 %v1869_v47 }
 0x2e3   : > { %v4113_v49 = vadd.f32 %v2453_v1, %v1724_v44  ;;  %v1727_v45 = vadd.f32 %v2392_v2, %v4044_v17 }
 0x2e5   : > { %v4116_v52 = vadd.f32 %v2456_v56, %v1727_v45  ;;  %v2393_v57 = vpop.f32.mrb[124].mxu0  ;;  %v2457_v59 = vpop.f32.mrb[124].mxu1  ;;  %v1872_v6 = vsel %vm1835_vm2, %v4113_v49, -inf }
 0x2e6   : > { %v2394_v25 = vpop.f32.mrb[125].mxu0  ;;  %v2458_v20 = vpop.f32.mrb[125].mxu1  ;;  %1873 = vmax.xlane.f32.xlu1 %v1872_v6 }
 0x2e7   : > { %v2395_v8 = vadd.f32 %v2394_v25, %v2393_v57  ;;  %v2459_v58 = vadd.f32 %v2458_v20, %v2457_v59  ;;  %v2396_v60 = vpop.f32.mrb[126].mxu0  ;;  %v2460_v15 = vpop.f32.mrb[126].mxu1  ;;  %v1875_v19 = vsel %vm1835_vm2, %v4116_v52, -inf }
 0x2e8   : > { %v2397_v61 = vpop.f32.mrb[127].mxu0  ;;  %v2461_v16 = vpop.f32.mrb[127].mxu1 }
 0x2e9   : > { %v1732_v39 = vadd.f32 %v2395_v8, %v4047_v63  ;;  %v2398_v10 = vadd.f32 %v2397_v61, %v2396_v60  ;;  %v2462_v17 = vadd.f32 %v2461_v16, %v2460_v15 }
 0x2ea   : > { %1876 = vmax.xlane.f32.xlu1 %v1875_v19 }
 0x2eb   : > { %v4123_v5 = vadd.f32 %v2459_v58, %v1732_v39  ;;  %v1735_v23 = vadd.f32 %v2398_v10, %v4050_v22 }
 0x2ed   : > { %v4126_v24 = vadd.f32 %v2462_v17, %v1735_v23  ;;  %v1878_v54 = vsel %vm1835_vm2, %v4123_v5, -inf }
 0x2ee   : > { %1879 = vmax.xlane.f32.xlu1 %v1878_v54 }
 0x2ef   : > { %v1881_v46 = vsel %vm1835_vm2, %v4126_v24, -inf }
 0x2f2   : > { %1882 = vmax.xlane.f32.xlu1 %v1881_v46 }
 0x343   : > { %v1838_v63 = vpop.xlane.xlu1 %1837 }
 0x344   : > { %v1884_v55 = vsub.f32 %v4053_v48, %v1838_v63 }
 0x346   : > { %v1900_v40 = vmul.f32 1.442695, %v1884_v55 }
 0x347   : > { %v1841_v7 = vpop.xlane.xlu1 %1840 }
 0x348   : > { %2508 = vpow2.f32 %v1900_v40  ;;  %v1885_v26 = vsub.f32 %v4056_v11, %v1841_v7 }
 0x34a   : > { %v1902_v14 = vmul.f32 1.442695, %v1885_v26 }
 0x34b   : > { %v1844_v22 = vpop.xlane.xlu1 %1843 }
 0x34c   : > { %2510 = vpow2.f32 %v1902_v14  ;;  %v1886_v29 = vsub.f32 %v4063_v51, %v1844_v22 }
 0x34e   : > { %v1904_v18 = vmul.f32 1.442695, %v1886_v29 }
 0x34f   : > { %v1847_v27 = vpop.xlane.xlu1 %1846 }
 0x350   : > { %2512 = vpow2.f32 %v1904_v18  ;;  %v1887_v30 = vsub.f32 %v4066_v4, %v1847_v27 }
 0x352   : > { %v4136_v0 = vpop.eup %2508  ;;  %v1906_v53 = vmul.f32 1.442695, %v1887_v30 }
 0x353   : > { %v1850_v35 = vpop.xlane.xlu1 %1849  ;;  %v1932_v37 = vsel %vm1835_vm2, %v4136_v0, 0.0 }
 0x354   : > { %2514 = vpow2.f32 %v1906_v53  ;;  %v1888_v38 = vsub.f32 %v4073_v12, %v1850_v35  ;;  %1933 = vadd.xlane.f32.xlu0 %v1932_v37 }
 0x356   : > { %v4141_v41 = vpop.eup %2510  ;;  %v1908_v62 = vmul.f32 1.442695, %v1888_v38 }
 0x357   : > { %v1853_v42 = vpop.xlane.xlu1 %1852  ;;  %v1935_v50 = vsel %vm1835_vm2, %v4141_v41, 0.0 }
 0x358   : > { %2516 = vpow2.f32 %v1908_v62  ;;  %v1889_v1 = vsub.f32 %v4076_v34, %v1853_v42  ;;  %1936 = vadd.xlane.f32.xlu1 %v1935_v50 }
 0x35a   : > { %v4146_v13 = vpop.eup %2512  ;;  %v1910_v31 = vmul.f32 1.442695, %v1889_v1 }
 0x35b   : > { %v1856_v21 = vpop.xlane.xlu1 %1855  ;;  %v1938_v43 = vsel %vm1835_vm2, %v4146_v13, 0.0 }
 0x35c   : > { %2518 = vpow2.f32 %v1910_v31  ;;  %v1890_v44 = vsub.f32 %v4083_v33, %v1856_v21  ;;  %1939 = vadd.xlane.f32.xlu1 %v1938_v43 }
 0x35e   : > { %v4151_v2 = vpop.eup %2514  ;;  %v1912_v56 = vmul.f32 1.442695, %v1890_v44 }
 0x35f   : > { %v1859_v47 = vpop.xlane.xlu1 %1858  ;;  %v1941_v45 = vsel %vm1835_vm2, %v4151_v2, 0.0 }
 0x360   : > { %2520 = vpow2.f32 %v1912_v56  ;;  %v1891_v57 = vsub.f32 %v4086_v32, %v1859_v47  ;;  %1942 = vadd.xlane.f32.xlu1 %v1941_v45 }
 0x362   : > { %v4156_v59 = vpop.eup %2516  ;;  %v1914_v6 = vmul.f32 1.442695, %v1891_v57 }
 0x363   : > { %v1862_v25 = vpop.xlane.xlu1 %1861  ;;  %v1944_v20 = vsel %vm1835_vm2, %v4156_v59, 0.0 }
 0x364   : > { %2522 = vpow2.f32 %v1914_v6  ;;  %v1892_v8 = vsub.f32 %v4093_v3, %v1862_v25  ;;  %1945 = vadd.xlane.f32.xlu0 %v1944_v20 }
 0x366   : > { %v4161_v58 = vpop.eup %2518  ;;  %v1916_v60 = vmul.f32 1.442695, %v1892_v8 }
 0x367   : > { %v1865_v15 = vpop.xlane.xlu1 %1864  ;;  %v1947_v61 = vsel %vm1835_vm2, %v4161_v58, 0.0 }
 0x368   : > { %2524 = vpow2.f32 %v1916_v60  ;;  %v1893_v16 = vsub.f32 %v4096_v9, %v1865_v15  ;;  %1948 = vadd.xlane.f32.xlu1 %v1947_v61 }
 0x36a   : > { %v4166_v39 = vpop.eup %2520  ;;  %v1918_v10 = vmul.f32 1.442695, %v1893_v16 }
 0x36b   : > { %v1868_v17 = vpop.xlane.xlu1 %1867  ;;  %v1950_v19 = vsel %vm1835_vm2, %v4166_v39, 0.0 }
 0x36c   : > { %2526 = vpow2.f32 %v1918_v10  ;;  %v1894_v23 = vsub.f32 %v4103_v28, %v1868_v17  ;;  %1951 = vadd.xlane.f32.xlu0 %v1950_v19 }
 0x36e   : > { %v4171_v54 = vpop.eup %2522  ;;  %v1920_v46 = vmul.f32 1.442695, %v1894_v23 }
 0x36f   : > { %v1871_v63 = vpop.xlane.xlu1 %1870  ;;  %v1953_v55 = vsel %vm1835_vm2, %v4171_v54, 0.0 }
 0x370   : > { %2528 = vpow2.f32 %v1920_v46  ;;  %v1895_v40 = vsub.f32 %v4106_v36, %v1871_v63  ;;  %1954 = vadd.xlane.f32.xlu1 %v1953_v55 }
 0x372   : > { %v4176_v7 = vpop.eup %2524  ;;  %v1922_v26 = vmul.f32 1.442695, %v1895_v40 }
 0x373   : > { %v1874_v14 = vpop.xlane.xlu1 %1873  ;;  %v1956_v22 = vsel %vm1835_vm2, %v4176_v7, 0.0 }
 0x374   : > { %2530 = vpow2.f32 %v1922_v26  ;;  %v1896_v29 = vsub.f32 %v4113_v49, %v1874_v14  ;;  %1957 = vadd.xlane.f32.xlu0 %v1956_v22 }
 0x376   : > { %v4181_v18 = vpop.eup %2526  ;;  %v1924_v27 = vmul.f32 1.442695, %v1896_v29 }
 0x377   : > { %v1877_v30 = vpop.xlane.xlu1 %1876  ;;  %v1959_v53 = vsel %vm1835_vm2, %v4181_v18, 0.0 }
 0x378   : > { %2532 = vpow2.f32 %v1924_v27  ;;  %v1897_v35 = vsub.f32 %v4116_v52, %v1877_v30  ;;  %1960 = vadd.xlane.f32.xlu1 %v1959_v53 }
 0x37a   : > { %v4186_v37 = vpop.eup %2528  ;;  %v1926_v38 = vmul.f32 1.442695, %v1897_v35 }
 0x37b   : > { %v1880_v62 = vpop.xlane.xlu1 %1879  ;;  %v1962_v42 = vsel %vm1835_vm2, %v4186_v37, 0.0 }
 0x37c   : > { %2534 = vpow2.f32 %v1926_v38  ;;  %v1898_v50 = vsub.f32 %v4123_v5, %v1880_v62  ;;  %1963 = vadd.xlane.f32.xlu0 %v1962_v42 }
 0x37e   : > { %v4191_v1 = vpop.eup %2530  ;;  %v1928_v31 = vmul.f32 1.442695, %v1898_v50 }
 0x37f   : > { %v1883_v21 = vpop.xlane.xlu1 %1882  ;;  %v1965_v43 = vsel %vm1835_vm2, %v4191_v1, 0.0 }
 0x380   : > { %2536 = vpow2.f32 %v1928_v31  ;;  %v1899_v44 = vsub.f32 %v4126_v24, %v1883_v21  ;;  %1966 = vadd.xlane.f32.xlu1 %v1965_v43 }
 0x382   : > { %v4196_v56 = vpop.eup %2532  ;;  %v1930_v47 = vmul.f32 1.442695, %v1899_v44 }
 0x383   : > { %v1968_v45 = vsel %vm1835_vm2, %v4196_v56, 0.0 }
 0x384   : > { %2538 = vpow2.f32 %v1930_v47  ;;  %1969 = vadd.xlane.f32.xlu0 %v1968_v45 }
 0x386   : > { %v4200_v57 = vpop.eup %2534 }
 0x387   : > { %v1971_v6 = vsel %vm1835_vm2, %v4200_v57, 0.0 }
 0x388   : > { %1972 = vadd.xlane.f32.xlu1 %v1971_v6 }
 0x38a   : > { %v4204_v25 = vpop.eup %2536 }
 0x38b   : > { %v1974_v20 = vsel %vm1835_vm2, %v4204_v25, 0.0 }
 0x38c   : > { %1975 = vadd.xlane.f32.xlu0 %v1974_v20 }
 0x38e   : > { %v4208_v8 = vpop.eup %2538 }
 0x38f   : > { %v1977_v60 = vsel %vm1835_vm2, %v4208_v8, 0.0 }
 0x390   : > { %1978 = vadd.xlane.f32.xlu1 %v1977_v60 }
 0x3e1   : > { %v1934_v15 = vpop.xlane.xlu0 %1933 }
 0x3e2   : > { %2540 = vrcp.f32 %v1934_v15 }
 0x3e5   : > { %v1937_v61 = vpop.xlane.xlu1 %1936 }
 0x3e6   : > { %2542 = vrcp.f32 %v1937_v61 }
 0x3e9   : > { %v1940_v16 = vpop.xlane.xlu1 %1939 }
 0x3ea   : > { %2544 = vrcp.f32 %v1940_v16 }
 0x3ec   : > { %v2541_v10 = vpop.eup %2540 }
 0x3ed   : > { %v1996_v17 = vmul.f32 %v2541_v10, %v1934_v15  ;;  %v1943_v19 = vpop.xlane.xlu1 %1942 }
 0x3ee   : > { %2546 = vrcp.f32 %v1943_v19 }
 0x3ef   : > { %v2012_v23 = vsub.f32 2.0, %v1996_v17 }
 0x3f0   : > { %v2543_v46 = vpop.eup %2542 }
 0x3f1   : > { %v2028_v63 = vmul.f32 %v2541_v10, %v2012_v23  ;;  %v1997_v55 = vmul.f32 %v2543_v46, %v1937_v61  ;;  %v1946_v40 = vpop.xlane.xlu0 %1945 }
 0x3f2   : > { %2548 = vrcp.f32 %v1946_v40 }
 0x3f3   : > { %v2044_v26 = vmul.f32 %v4136_v0, %v2028_v63  ;;  %v2013_v14 = vsub.f32 2.0, %v1997_v55 }
 0x3f4   : > { %v2545_v22 = vpop.eup %2544 }
 0x3f5   : > { %v2060_v29 = vsel %vm1835_vm2, %v2044_v26, %v4053_v48  ;;  %v2029_v27 = vmul.f32 %v2543_v46, %v2013_v14  ;;  %v1998_v30 = vmul.f32 %v2545_v22, %v1940_v16  ;;  %v1949_v53 = vpop.xlane.xlu1 %1948 }
 0x3f6   : > { %2077 = vst.msk [vmem:[%s4217_s22] sm:$0xff] %vm2076_vm3, %v2060_v29  ;;  %2550 = vrcp.f32 %v1949_v53 }
 0x3f7   : > { %v2045_v35 = vmul.f32 %v4141_v41, %v2029_v27  ;;  %v2014_v38 = vsub.f32 2.0, %v1998_v30 }
 0x3f8   : > { %v2547_v62 = vpop.eup %2546 }
 0x3f9   : > { %v2061_v0 = vsel %vm1835_vm2, %v2045_v35, %v4056_v11  ;;  %v2030_v42 = vmul.f32 %v2545_v22, %v2014_v38  ;;  %v1999_v50 = vmul.f32 %v2547_v62, %v1943_v19  ;;  %v1952_v31 = vpop.xlane.xlu0 %1951 }
 0x3fa   : > { %2078 = vst.msk [vmem:[%s4217_s22 + $0x8] sm:$0xff] %vm2076_vm3, %v2061_v0  ;;  %2552 = vrcp.f32 %v1952_v31 }
 0x3fb   : > { %v2046_v48 = vmul.f32 %v4146_v13, %v2030_v42  ;;  %v2015_v21 = vsub.f32 2.0, %v1999_v50 }
 0x3fc   : > { %v2549_v43 = vpop.eup %2548 }
 0x3fd   : > { %v2062_v41 = vsel %vm1835_vm2, %v2046_v48, %v4063_v51  ;;  %v2031_v44 = vmul.f32 %v2547_v62, %v2015_v21  ;;  %v2000_v47 = vmul.f32 %v2549_v43, %v1946_v40  ;;  %v1955_v45 = vpop.xlane.xlu1 %1954 }
 0x3fe   : > { %2079 = vst.msk [vmem:[%s4217_s22 + $0x10] sm:$0xff] %vm2076_vm3, %v2062_v41  ;;  %2554 = vrcp.f32 %v1955_v45 }
 0x3ff   : > { %v2047_v11 = vmul.f32 %v4151_v2, %v2031_v44  ;;  %v2016_v6 = vsub.f32 2.0, %v2000_v47 }
 0x400   : > { %v2551_v20 = vpop.eup %2550 }
 0x401   : > { %v2063_v13 = vsel %vm1835_vm2, %v2047_v11, %v4066_v4  ;;  %v2032_v60 = vmul.f32 %v2549_v43, %v2016_v6  ;;  %v2001_v15 = vmul.f32 %v2551_v20, %v1949_v53  ;;  %v1958_v61 = vpop.xlane.xlu0 %1957 }
 0x402   : > { %2080 = vst.msk [vmem:[%s4217_s22 + $0x18] sm:$0xff] %vm2076_vm3, %v2063_v13  ;;  %2556 = vrcp.f32 %v1958_v61 }
 0x403   : > { %v2048_v51 = vmul.f32 %v4156_v59, %v2032_v60  ;;  %v2017_v16 = vsub.f32 2.0, %v2001_v15 }
 0x404   : > { %v2553_v10 = vpop.eup %2552 }
 0x405   : > { %v2064_v2 = vsel %vm1835_vm2, %v2048_v51, %v4073_v12  ;;  %v2033_v17 = vmul.f32 %v2551_v20, %v2017_v16  ;;  %v2002_v19 = vmul.f32 %v2553_v10, %v1952_v31  ;;  %v1961_v23 = vpop.xlane.xlu1 %1960 }
 0x406   : > { %2081 = vst.msk [vmem:[%s4217_s22 + $0x20] sm:$0xff] %vm2076_vm3, %v2064_v2  ;;  %2558 = vrcp.f32 %v1961_v23 }
 0x407   : > { %v2049_v4 = vmul.f32 %v4161_v58, %v2033_v17  ;;  %v2018_v46 = vsub.f32 2.0, %v2002_v19 }
 0x408   : > { %v2555_v63 = vpop.eup %2554 }
 0x409   : > { %v2065_v59 = vsel %vm1835_vm2, %v2049_v4, %v4076_v34  ;;  %v2034_v55 = vmul.f32 %v2553_v10, %v2018_v46  ;;  %v2003_v40 = vmul.f32 %v2555_v63, %v1955_v45  ;;  %v1964_v26 = vpop.xlane.xlu0 %1963 }
 0x40a   : > { %2082 = vst.msk [vmem:[%s4217_s22 + $0x28] sm:$0xff] %vm2076_vm3, %v2065_v59  ;;  %2560 = vrcp.f32 %v1964_v26 }
 0x40b   : > { %v2050_v12 = vmul.f32 %v4166_v39, %v2034_v55  ;;  %v2019_v14 = vsub.f32 2.0, %v2003_v40 }
 0x40c   : > { %v2557_v22 = vpop.eup %2556 }
 0x40d   : > { %v2066_v58 = vsel %vm1835_vm2, %v2050_v12, %v4083_v33  ;;  %v2035_v29 = vmul.f32 %v2555_v63, %v2019_v14  ;;  %v2004_v27 = vmul.f32 %v2557_v22, %v1958_v61  ;;  %v1967_v30 = vpop.xlane.xlu1 %1966 }
 0x40e   : > { %2083 = vst.msk [vmem:[%s4217_s22 + $0x30] sm:$0xff] %vm2076_vm3, %v2066_v58  ;;  %2562 = vrcp.f32 %v1967_v30 }
 0x40f   : > { %v2051_v34 = vmul.f32 %v4171_v54, %v2035_v29  ;;  %v2020_v53 = vsub.f32 2.0, %v2004_v27 }
 0x410   : > { %v2559_v35 = vpop.eup %2558 }
 0x411   : > { %v2067_v39 = vsel %vm1835_vm2, %v2051_v34, %v4086_v32  ;;  %v2036_v38 = vmul.f32 %v2557_v22, %v2020_v53  ;;  %v2005_v62 = vmul.f32 %v2559_v35, %v1961_v23  ;;  %v1970_v0 = vpop.xlane.xlu0 %1969 }
 0x412   : > { %2084 = vst.msk [vmem:[%s4217_s22 + $0x38] sm:$0xff] %vm2076_vm3, %v2067_v39  ;;  %2564 = vrcp.f32 %v1970_v0 }
 0x413   : > { %v2052_v33 = vmul.f32 %v4176_v7, %v2036_v38  ;;  %v2021_v42 = vsub.f32 2.0, %v2005_v62 }
 0x414   : > { %v2561_v50 = vpop.eup %2560 }
 0x415   : > { %v2068_v54 = vsel %vm1835_vm2, %v2052_v33, %v4093_v3  ;;  %v2037_v31 = vmul.f32 %v2559_v35, %v2021_v42  ;;  %v2006_v48 = vmul.f32 %v2561_v50, %v1964_v26  ;;  %v1973_v21 = vpop.xlane.xlu1 %1972 }
 0x416   : > { %2085 = vst.msk [vmem:[%s4217_s22 + $0x40] sm:$0xff] %vm2076_vm3, %v2068_v54  ;;  %2566 = vrcp.f32 %v1973_v21 }
 0x417   : > { %v2053_v32 = vmul.f32 %v4181_v18, %v2037_v31  ;;  %v2022_v43 = vsub.f32 2.0, %v2006_v48 }
 0x418   : > { %v2563_v41 = vpop.eup %2562 }
 0x419   : > { %v2069_v7 = vsel %vm1835_vm2, %v2053_v32, %v4096_v9  ;;  %v2038_v44 = vmul.f32 %v2561_v50, %v2022_v43  ;;  %v2007_v47 = vmul.f32 %v2563_v41, %v1967_v30  ;;  %v1976_v45 = vpop.xlane.xlu0 %1975 }
 0x41a   : > { %2086 = vst.msk [vmem:[%s4217_s22 + $0x48] sm:$0xff] %vm2076_vm3, %v2069_v7  ;;  %2568 = vrcp.f32 %v1976_v45 }
 0x41b   : > { %v2054_v3 = vmul.f32 %v4186_v37, %v2038_v44  ;;  %v2023_v11 = vsub.f32 2.0, %v2007_v47 }
 0x41c   : > { %v2565_v6 = vpop.eup %2564 }
 0x41d   : > { %v2070_v18 = vsel %vm1835_vm2, %v2054_v3, %v4103_v28  ;;  %v2039_v20 = vmul.f32 %v2563_v41, %v2023_v11  ;;  %v2008_v13 = vmul.f32 %v2565_v6, %v1970_v0  ;;  %v1979_v60 = vpop.xlane.xlu1 %1978 }
 0x41e   : > { %2087 = vst.msk [vmem:[%s4217_s22 + $0x50] sm:$0xff] %vm2076_vm3, %v2070_v18  ;;  %2570 = vrcp.f32 %v1979_v60 }
 0x41f   : > { %v2055_v9 = vmul.f32 %v4191_v1, %v2039_v20  ;;  %v2024_v15 = vsub.f32 2.0, %v2008_v13 }
 0x420   : > { %v2567_v61 = vpop.eup %2566 }
 0x421   : > { %v2071_v51 = vsel %vm1835_vm2, %v2055_v9, %v4106_v36  ;;  %v2040_v37 = vmul.f32 %v2565_v6, %v2024_v15  ;;  %v2009_v16 = vmul.f32 %v2567_v61, %v1973_v21 }
 0x422   : > { %2088 = vst.msk [vmem:[%s4217_s22 + $0x58] sm:$0xff] %vm2076_vm3, %v2071_v51 }
 0x423   : > { %v2056_v28 = vmul.f32 %v4196_v56, %v2040_v37  ;;  %v2025_v10 = vsub.f32 2.0, %v2009_v16 }
 0x424   : > { %v2569_v2 = vpop.eup %2568 }
 0x425   : > { %v2072_v17 = vsel %vm1835_vm2, %v2056_v28, %v4113_v49  ;;  %v2041_v19 = vmul.f32 %v2567_v61, %v2025_v10  ;;  %v2010_v1 = vmul.f32 %v2569_v2, %v1976_v45 }
 0x426   : > { %2089 = vst.msk [vmem:[%s4217_s22 + $0x60] sm:$0xff] %vm2076_vm3, %v2072_v17 }
 0x427   : > { %v2057_v36 = vmul.f32 %v4200_v57, %v2041_v19  ;;  %v2026_v23 = vsub.f32 2.0, %v2010_v1 }
 0x428   : > { %v2571_v4 = vpop.eup %2570 }
 0x429   : > { %v2073_v46 = vsel %vm1835_vm2, %v2057_v36, %v4116_v52  ;;  %v2042_v63 = vmul.f32 %v2569_v2, %v2026_v23  ;;  %v2011_v56 = vmul.f32 %v2571_v4, %v1979_v60 }
 0x42a   : > { %2090 = vst.msk [vmem:[%s4217_s22 + $0x68] sm:$0xff] %vm2076_vm3, %v2073_v46 }
 0x42b   : > { %v2058_v59 = vmul.f32 %v4204_v25, %v2042_v63  ;;  %v2027_v55 = vsub.f32 2.0, %v2011_v56 }
 0x42d   : > { %v2074_v49 = vsel %vm1835_vm2, %v2058_v59, %v4123_v5  ;;  %v2043_v40 = vmul.f32 %v2571_v4, %v2027_v55 }
 0x42e   : > { %2091 = vst.msk [vmem:[%s4217_s22 + $0x70] sm:$0xff] %vm2076_vm3, %v2074_v49 }
 0x42f   : > { %v2059_v57 = vmul.f32 %v4208_v8, %v2043_v40 }
 0x431   : > { %v2075_v26 = vsel %vm1835_vm2, %v2059_v57, %v4126_v24 }
 0x432   : > { %2092 = vst.msk [vmem:[%s4217_s22 + $0x78] sm:$0xff] %vm2076_vm3, %v2075_v26 }
 0x433 PF: > { %p15_p8 = scmp.ge.s32.totalorder %s2692_s23, 4   ;;  %s4320_s18 = smov %s2628_s19 }
 0x434   : > { %s4321_s19 = smov %s2632_s20  ;;  %s4322_s20 = smov %s2702_s26 }
 0x435   : > { %s4323_s21 = smov %s2692_s23  ;;  %17 = sbr.rel (!%p15_p8) target bundleno = 3 (0x3), region = 80 }
 0x43c   :  { %2115 = vsyncpa [#allocation3], 1 }
 0x43d   :  { %2117 = vsyncpa [#allocation3 + $0x1], 1 }

</bundles_post_ra>
